<compile_context>
chip_gen: v7x
topology: tpu7x:2x2x1
jax: 0.10.0
libtpu: 0.0.40
codegen_flags: <defaults>
</compile_context>

<pallas_src>
import numpy as np
import jax
import jax.numpy as jnp
from jax.experimental import pallas as pl
from jax.experimental.pallas import tpu as pltpu

HIGHEST = jax.lax.Precision.HIGHEST


def _round_up(x, m):
    return ((x + m - 1) // m) * m


# ----------------------------------------------------------------------------
# Static layout: packed-input rows and fused stage-1 GEMM output rows.
# ----------------------------------------------------------------------------
def _make_layout(S, A, N, E, K, Q, H):
    L = {}
    # packed input rows (feature-major): [states|actions|max_q_i|agent_qs|ones|pad]
    L["IN_S"] = 0
    L["IN_A"] = S
    L["IN_MQ"] = S + A
    L["IN_AQ"] = S + A + N
    L["IN_ONE"] = S + A + N + N * Q          # constant-ones row -> stage-1 biases
    L["C_IN"] = L["IN_ONE"] + 1
    L["C_IN_PAD"] = _round_up(max(L["C_IN"], 128), 128)

    # fused stage-1 GEMM output rows (all section starts multiples of 8)
    off = 0
    L["OFF_HW1"] = off; off += H             # hyper_w_1 layer-1 hidden
    L["OFF_HWF"] = off; off += H             # hyper_w_final layer-1 hidden
    L["OFF_ONE"] = off; off += 8             # constant-one row -> stage-2 biases
    L["S2_IN"] = off                         # stage-2 GEMM reads rows [0, S2_IN)
    L["OFF_B1"] = off; off += _round_up(E, 8)        # hyper_b_1
    L["OFF_V1"] = off; off += _round_up(E, 8)        # V layer-1 hidden
    L["OFF_KEY"] = off; off += _round_up(K, 8)       # DMAQ key extractors
    L["OFF_AG"] = off; off += _round_up(K * N, 8)    # DMAQ agents extractors
    L["OFF_AC"] = off; off += _round_up(K * N, 8)    # DMAQ action extractors
    L["OFF_QS"] = off; off += 8                      # q_vals_sum (1 row used)
    L["OFF_QM"] = off; off += _round_up(Q, 8)        # q_mixture
    L["OFF_QE"] = off; off += _round_up(N * E, 8)    # q_expected bcast [n,e]
    L["OFF_MQ"] = off; off += _round_up(N * E, 8)    # max_q_i   bcast [n,e]
    L["C1"] = _round_up(off, 8)

    L["OUT_ROWS"] = _round_up(Q + 3, 8)      # Q rows of q_joint + 3 reg partials
    return L


# ----------------------------------------------------------------------------
# Pallas kernel (feature-major): fused hypernets, QMIX weighted head, DMAQ
# advantage weights, quantile terms, regularizer partials.
# ----------------------------------------------------------------------------
def make_dplex_kernel(dims, *, is_v, is_minus_one):
    N, E, K, Q = dims["N"], dims["E"], dims["K"], dims["Q"]
    NE = N * E
    L = dims

    def kernel(x_ref, w1_ref, w2_ref, sel_ref, v2w_ref, v2b_ref, out_ref):
        relu = lambda t: jnp.maximum(t, 0.0)
        elu = lambda t: jnp.where(t > 0.0, t,
                                  jnp.exp(jnp.minimum(t, 0.0)) - 1.0)
        # sigmoid via EUP reciprocal (per review); inputs are O(1) GEMM outputs.
        sigmoid = lambda t: pl.reciprocal(1.0 + jnp.exp(-t), approx=True)

        # ---- stage-1 fused GEMM (bf16 passes, f32 accumulation). Biases ride
        # on the constant-ones input row, quantile reductions / broadcasts ride
        # as extra output rows -> no per-row VPU loops anywhere below.
        h = jnp.dot(w1_ref[...], x_ref[...],
                    preferred_element_type=jnp.float32)          # (C1, TILE)

        # ---- stage-2 fused block-diagonal GEMM: both hypernet heads at once.
        s2_in = relu(h[0:L["S2_IN"], :]).astype(jnp.bfloat16)
        s2 = jnp.dot(w2_ref[...], s2_in,
                     preferred_element_type=jnp.float32)         # (2*N*E, TILE)
        w1 = jnp.abs(s2[0:NE, :])                                # rows [n,e]
        wf = jnp.abs(s2[NE:2 * NE, :]) + 1e-10                   # rows [n,e]
        b1 = h[L["OFF_B1"]:L["OFF_B1"] + E, :]                   # (E, TILE)

        def mix_hidden(cols_bcast):
            # cols_bcast: (N*E, TILE), row n*E+e = per-agent value (from GEMM).
            prod = cols_bcast * w1
            acc = prod[0:E, :]                                   # aligned slices
            for n in range(1, N):
                acc = acc + prod[n * E:(n + 1) * E, :]
            return elu(b1 + acc)                                 # (E, TILE)

        hid_q = mix_hidden(h[L["OFF_QE"]:L["OFF_QE"] + NE, :])

        if is_v:
            # TODO(synk): calc_v branch implemented but not exercised by the demo.
            hv = relu(h[L["OFF_V1"]:L["OFF_V1"] + E, :])
            v = jnp.sum(hv * v2w_ref[...], axis=0, keepdims=True) + v2b_ref[...]
            hid_q_t = jnp.concatenate([hid_q] * N, axis=0)       # (N*E, TILE)
            y = jnp.sum(hid_q_t * wf, axis=0, keepdims=True) + v
        else:
            hid_m = mix_hidden(h[L["OFF_MQ"]:L["OFF_MQ"] + NE, :])
            # V(states) cancels in agents_qs - max_q_t, so it is never needed here.
            dh = jnp.concatenate([hid_q - hid_m] * N, axis=0)    # (N*E, TILE)
            g = dh * wf
            # per-agent sums over e via a tiny constant selector matmul (idle MXU)
            gs = jnp.dot(sel_ref[...], g,
                         preferred_element_type=jnp.float32)     # (8, TILE)
            # DMAQ_SI_Weight advantage weights
            key = jnp.abs(h[L["OFF_KEY"]:L["OFF_KEY"] + K, :]) + 1e-10
            ag = sigmoid(h[L["OFF_AG"]:L["OFF_AG"] + K * N, :])
            ac = sigmoid(h[L["OFF_AC"]:L["OFF_AC"] + K * N, :])
            adv_w = key[0:1, :] * ag[0:N, :] * ac[0:N, :]
            for k in range(1, K):
                adv_w = adv_w + key[k:k + 1, :] \
                    * ag[k * N:(k + 1) * N, :] * ac[k * N:(k + 1) * N, :]
            if is_minus_one:
                adv_w = adv_w - 1.0
            y = jnp.sum(gs[0:N, :] * adv_w, axis=0, keepdims=True)   # (1, TILE)

        # q_joint = q_mixture - q_vals_sum + y   (lane-dense (Q, TILE) slab)
        qj = h[L["OFF_QM"]:L["OFF_QM"] + Q, :] \
            + (y - h[L["OFF_QS"]:L["OFF_QS"] + 1, :])
        out_ref[0:Q, :] = qj

        # regularizer partials: reduce over feature rows only, keep lanes; the
        # wrapper slices off padded rows and finishes the sums.  Rides in the
        # same output DMA stream as q_joint.
        rw1 = jnp.sum(w1 * w1, axis=0, keepdims=True)
        rb1 = jnp.sum(b1 * b1, axis=0, keepdims=True)
        rwf = jnp.sum(wf * wf, axis=0, keepdims=True)
        tail = [rw1, rb1, rwf]
        pad_rows = L["OUT_ROWS"] - Q - 3
        if pad_rows:
            tail.append(jnp.zeros((pad_rows, rw1.shape[1]), jnp.float32))
        out_ref[Q:L["OUT_ROWS"], :] = jnp.concatenate(tail, axis=0)

    return kernel


# ----------------------------------------------------------------------------
# One-time parameter preprocessing: build the two fused GEMM weights (biases
# folded via the ones rows), the wf column permutation, the group selector.
# ----------------------------------------------------------------------------
def preprocess_dplex_params(P, *, n_agents, embed_dim, num_kernel, n_actions,
                            n_quantiles):
    N, E, K, Q = n_agents, embed_dim, num_kernel, n_quantiles
    S = int(P["w1a_w"].shape[0])
    H = int(P["w1a_w"].shape[1])
    A = N * n_actions
    L = _make_layout(S, A, N, E, K, Q, H)
    f = lambda a: np.asarray(a, np.float32)

    W1 = np.zeros((L["C1"], L["C_IN_PAD"]), np.float32)
    one = L["IN_ONE"]

    def put(off, w, b, col=0):
        w, b = f(w), f(b)
        W1[off:off + w.shape[1], col:col + w.shape[0]] = w.T
        W1[off:off + w.shape[1], one] = b

    put(L["OFF_HW1"], P["w1a_w"], P["w1a_b"])        # hyper_w_1 layer 1
    put(L["OFF_HWF"], P["wfa_w"], P["wfa_b"])        # hyper_w_final layer 1
    W1[L["OFF_ONE"], one] = 1.0                      # ones row -> stage-2 biases
    put(L["OFF_B1"], P["hb1_w"], P["hb1_b"])         # hyper_b_1
    put(L["OFF_V1"], P["v1_w"], P["v1_b"])           # V layer 1
    put(L["OFF_KEY"], P["key_w"], P["key_b"])        # DMAQ key extractors
    put(L["OFF_AG"], P["ag_w"], P["ag_b"])           # DMAQ agents extractors
    ac_w = f(P["ac_w"])                              # DMAQ action extractors
    W1[L["OFF_AC"]:L["OFF_AC"] + K * N, 0:S] = ac_w[:S].T
    W1[L["OFF_AC"]:L["OFF_AC"] + K * N, S:S + A] = ac_w[S:].T
    W1[L["OFF_AC"]:L["OFF_AC"] + K * N, one] = f(P["ac_b"])

    aq, mq = L["IN_AQ"], L["IN_MQ"]
    W1[L["OFF_QS"], aq:aq + N * Q] = 1.0 / Q                      # q_vals_sum
    for q in range(Q):                                            # q_mixture
        for n in range(N):
            W1[L["OFF_QM"] + q, aq + n * Q + q] = 1.0
    for n in range(N):
        W1[L["OFF_QE"] + n * E:L["OFF_QE"] + (n + 1) * E,
           aq + n * Q:aq + (n + 1) * Q] = 1.0 / Q                 # q_exp bcast
        W1[L["OFF_MQ"] + n * E:L["OFF_MQ"] + (n + 1) * E, mq + n] = 1.0

    # Stage-2 block-diagonal weight: [w1 head | wf head], bias on OFF_ONE column.
    W2 = np.zeros((2 * N * E, L["S2_IN"]), np.float32)
    W2[0:N * E, 0:H] = f(P["w1b_w"]).T
    W2[0:N * E, L["OFF_ONE"]] = f(P["w1b_b"])
    perm = np.array([e * N + n for n in range(N) for e in range(E)], np.int32)
    W2[N * E:2 * N * E, H:2 * H] = f(P["wfb_w"])[:, perm].T
    W2[N * E:2 * N * E, L["OFF_ONE"]] = f(P["wfb_b"])[perm]

    sel = np.zeros((_round_up(N, 8), N * E), np.float32)          # group selector
    for n in range(N):
        sel[n, n * E:(n + 1) * E] = 1.0

    packed = dict(
        W1=jnp.asarray(W1, jnp.bfloat16),
        W2=jnp.asarray(W2, jnp.bfloat16),
        sel=jnp.asarray(sel, jnp.float32),
        v2w=jnp.asarray(f(P["v2_w"]).reshape(E, 1)),
        v2b=jnp.asarray(f(P["v2_b"]).reshape(1, 1)),
    )
    dims = dict(S=S, A=A, N=N, E=E, K=K, Q=Q, H=H, **L)
    return packed, dims


# ----------------------------------------------------------------------------
# Forward wrapper: feature-major packing, pallas_call, finishing reductions.
# ----------------------------------------------------------------------------
def dplex_mixer_forward(agent_qs, states, actions, max_q_i, packed, dims, *,
                        target=False, is_v=False, is_minus_one=True,
                        tile_rows=512):
    S, A, N, E, K, Q = (dims[k] for k in ("S", "A", "N", "E", "K", "Q"))
    B, T = agent_qs.shape[0], agent_qs.shape[1]
    BT = B * T
    if agent_qs.shape[2] == 1:
        agent_qs = jnp.broadcast_to(agent_qs, (B, T, N, Q))
    if target:
        # TODO(synk): target=True trailing-mean kept for module parity but not
        # exercised by the demo (assumes suitably-shaped target inputs).
        max_q_i = max_q_i.mean(axis=-1)
        actions = actions.mean(axis=-1)

    # Feature-major packed slab: rows [states|actions|max_q_i|agent_qs|ones|pad],
    # lanes = batch*episode rows.  bf16 to halve HBM traffic; ones row feeds the
    # stage-1 biases inside the fused GEMM.
    # NOTE: production callers should build/keep this slab upstream once per
    # step; here the packing is one small XLA pass before the kernel.
    rows = [
        states.reshape(BT, S).astype(jnp.float32).T,
        actions.reshape(BT, A).astype(jnp.float32).T,
        max_q_i.reshape(BT, N).astype(jnp.float32).T,
        agent_qs.reshape(BT, N * Q).astype(jnp.float32).T,
        jnp.ones((1, BT), jnp.float32),
    ]
    x = jnp.concatenate(rows, axis=0).astype(jnp.bfloat16)

    # Row tiling: big lane-dense tiles; when BT is large enough, at least 2
    # tiles so both v7x TensorCores get work ("parallel" grid axis).
    if BT <= 256:
        TILE = max(8, _round_up(BT, 8))
    else:
        TILE = min(_round_up(int(tile_rows), 128), _round_up((BT + 1) // 2, 128))
        TILE = max(TILE, 128)
    BT_pad = _round_up(BT, TILE)
    num_tiles = BT_pad // TILE
    x = jnp.pad(x, ((0, dims["C_IN_PAD"] - dims["C_IN"]), (0, BT_pad - BT)))

    kernel = make_dplex_kernel(dims, is_v=is_v, is_minus_one=is_minus_one)
    weights = (packed["W1"], packed["W2"], packed["sel"],
               packed["v2w"], packed["v2b"])

    in_specs = [pl.BlockSpec((dims["C_IN_PAD"], TILE), lambda i: (0, i))]
    # Weights: full-array blocks, constant index_map (resident across the grid).
    in_specs += [pl.BlockSpec(w.shape, lambda i: (0, 0)) for w in weights]
    out_specs = pl.BlockSpec((dims["OUT_ROWS"], TILE), lambda i: (0, i))
    out_shape = jax.ShapeDtypeStruct((dims["OUT_ROWS"], BT_pad), jnp.float32)

    out = pl.pallas_call(
        kernel,
        out_shape=out_shape,
        grid=(num_tiles,),
        in_specs=in_specs,
        out_specs=out_specs,
        compiler_params=pltpu.CompilerParams(
            dimension_semantics=("parallel",)),
    )(x, *weights)

    q_joint = out[0:Q, :BT].T.reshape(B, T, 1, Q)
    reg_sums = jnp.sum(out[Q:Q + 3, :BT], axis=1)
    weight_mag_regs = 0.001 * (reg_sums[0] / (BT * N * E)
                               + reg_sums[1] / (BT * E)
                               + reg_sums[2] / (BT * E * N))
    return q_joint, weight_mag_regs


# ----------------------------------------------------------------------------
# Pure-JAX reference (mirrors the PyTorch forward, Precision.HIGHEST).
# ----------------------------------------------------------------------------
def reference_forward(agent_qs, states, actions, max_q_i, P, *,
                      n_agents, embed_dim, num_kernel, n_actions,
                      target=False, is_v=False, is_minus_one=True):
    N, E, K = n_agents, embed_dim, num_kernel
    B, T = agent_qs.shape[0], agent_qs.shape[1]
    Q = agent_qs.shape[3]
    if agent_qs.shape[2] == 1:
        agent_qs = jnp.broadcast_to(agent_qs, (B, T, N, Q))

    q_mixture = agent_qs.sum(axis=2, keepdims=True)
    q_vals_expected = agent_qs.mean(axis=3, keepdims=True)
    q_vals_sum = q_vals_expected.sum(axis=2, keepdims=True)

    if target:
        max_q_i = max_q_i.mean(axis=-1)
        actions = actions.mean(axis=-1)

    s = states.reshape(-1, states.shape[-1])
    q = q_vals_expected.reshape(-1, N)
    mq = max_q_i.reshape(-1, N)
    a = actions.reshape(-1, N * n_actions)

    lin = lambda x, w, b: jnp.dot(x, w, precision=HIGHEST) + b
    relu = lambda x: jnp.maximum(x, 0.0)
    elu = lambda x: jnp.where(x > 0.0, x, jnp.exp(x) - 1.0)
    sig = lambda x: 1.0 / (1.0 + jnp.exp(-x))

    w1 = jnp.abs(lin(relu(lin(s, P["w1a_w"], P["w1a_b"])),
                     P["w1b_w"], P["w1b_b"])).reshape(-1, N, E)
    b1 = lin(s, P["hb1_w"], P["hb1_b"])
    wf = jnp.abs(lin(relu(lin(s, P["wfa_w"], P["wfa_b"])),
                     P["wfb_w"], P["wfb_b"])).reshape(-1, E, N) + 1e-10
    v = lin(relu(lin(s, P["v1_w"], P["v1_b"])), P["v2_w"], P["v2_b"]).reshape(-1, 1)
    v = jnp.repeat(v, N, axis=1) / N

    def head(x):
        hid = elu(jnp.einsum("rn,rne->re", x, w1, precision=HIGHEST) + b1)
        return jnp.einsum("re,ren->rn", hid, wf, precision=HIGHEST) + v

    agents_qs = head(q)
    if is_v:
        y = agents_qs.sum(axis=1)
    else:
        max_q_t = head(mq)
        adv_q = agents_qs - max_q_t
        data = jnp.concatenate([s, a], axis=1)
        key = jnp.abs(lin(s, P["key_w"], P["key_b"]))
        ag = sig(lin(s, P["ag_w"], P["ag_b"])).reshape(-1, K, N)
        ac = sig(lin(data, P["ac_w"], P["ac_b"])).reshape(-1, K, N)
        adv_w = ((key[:, :, None] + 1e-10) * ag * ac).sum(axis=1)
        y = ((adv_q * (adv_w - 1.0)).sum(axis=1) if is_minus_one
             else (adv_q * adv_w).sum(axis=1))

    regs = 0.001 * ((w1 ** 2).mean() + (b1 ** 2).mean() + (wf ** 2).mean())
    q_joint_expected = y.reshape(B, T, 1, 1)
    q_joint = q_mixture - q_vals_sum + q_joint_expected
    return q_joint, regs


# ----------------------------------------------------------------------------
# Deterministic parameter init (PyTorch nn.Linear-style uniform).
# ----------------------------------------------------------------------------
def init_linear(key, fan_in, fan_out):
    k1, k2 = jax.random.split(key)
    bound = 1.0 / np.sqrt(fan_in)
    w = jax.random.uniform(k1, (fan_in, fan_out), jnp.float32, -bound, bound)
    b = jax.random.uniform(k2, (fan_out,), jnp.float32, -bound, bound)
    return w, b


if __name__ == "__main__":
    B, T = 2, 4                 # batch, episode length (B*T = 8 rows)
    N, n_actions = 4, 6         # n_agents, n_actions
    S = 32                      # state_dim
    E = 32                      # mixing_embed_dim
    H = 64                      # hypernet_embed
    Q = 8                       # n_quantiles (= n_target_quantiles)
    K = 4                       # num_kernel (DMAQ_SI_Weight heads)
    A = N * n_actions

    key = jax.random.PRNGKey(0)
    keys = jax.random.split(key, 16)

    P = {}
    P["w1a_w"], P["w1a_b"] = init_linear(keys[0], S, H)          # hyper_w_1 layer 1
    P["w1b_w"], P["w1b_b"] = init_linear(keys[1], H, N * E)      # hyper_w_1 layer 2
    P["wfa_w"], P["wfa_b"] = init_linear(keys[2], S, H)          # hyper_w_final layer 1
    P["wfb_w"], P["wfb_b"] = init_linear(keys[3], H, N * E)      # hyper_w_final layer 2
    P["hb1_w"], P["hb1_b"] = init_linear(keys[4], S, E)          # hyper_b_1
    P["v1_w"], P["v1_b"] = init_linear(keys[5], S, E)            # V layer 1
    P["v2_w"], P["v2_b"] = init_linear(keys[6], E, 1)            # V layer 2
    P["key_w"], P["key_b"] = init_linear(keys[7], S, K)          # stacked key extractors
    P["ag_w"], P["ag_b"] = init_linear(keys[8], S, K * N)        # stacked agents extractors
    P["ac_w"], P["ac_b"] = init_linear(keys[9], S + A, K * N)    # stacked action extractors

    agent_qs = jax.random.normal(keys[10], (B, T, N, Q), jnp.float32)
    states = jax.random.normal(keys[11], (B, T, S), jnp.float32)
    act_idx = jax.random.randint(keys[12], (B, T, N), 0, n_actions)
    actions = jax.nn.one_hot(act_idx, n_actions, dtype=jnp.float32)
    max_q_i = jax.random.normal(keys[13], (B, T, N), jnp.float32)

    packed, dims = preprocess_dplex_params(
        P, n_agents=N, embed_dim=E, num_kernel=K,
        n_actions=n_actions, n_quantiles=Q)

    q_joint, regs = dplex_mixer_forward(
        agent_qs, states, actions, max_q_i, packed, dims,
        target=False, is_v=False, is_minus_one=True, tile_rows=512)
    q_joint = jax.block_until_ready(q_joint)
    regs = jax.block_until_ready(regs)

    q_ref, regs_ref = reference_forward(agent_qs, states, actions, max_q_i, P,
                                        n_agents=N, embed_dim=E, num_kernel=K,
                                        n_actions=n_actions,
                                        target=False, is_v=False,
                                        is_minus_one=True)

    assert q_joint.shape == (B, T, 1, Q)
    # Tolerances are intentionally looser than f32 roundoff: inputs/weights are
    # stored bf16 and the matmuls run bf16 MXU passes (f32 accumulation), while
    # the reference runs at Precision.HIGHEST.
    assert np.allclose(np.asarray(q_joint), np.asarray(q_ref),
                       atol=2.5e-1, rtol=5e-2), \
        float(np.abs(np.asarray(q_joint) - np.asarray(q_ref)).max())
    assert np.allclose(float(regs), float(regs_ref), atol=1e-4, rtol=5e-2), \
        (float(regs), float(regs_ref))

    # TODO(synk): target=True / is_v=True static branches are implemented but
    # not exercised by this demo run.
    print("KERNEL_OK")
</pallas_src>

<mosaic_0001>
module attributes {stable_mosaic.version = 11 : i64} {
  func.func @kernel(%arg0: i32, %arg1: memref<128x8xbf16, #tpu.memory_space<vmem>>, %arg2: memref<512x128xbf16, #tpu.memory_space<vmem>>, %arg3: memref<256x136xbf16, #tpu.memory_space<vmem>>, %arg4: memref<8x128xf32, #tpu.memory_space<vmem>>, %arg5: memref<32x1xf32, #tpu.memory_space<vmem>>, %arg6: memref<1x1xf32, #tpu.memory_space<vmem>>, %arg7: memref<16x8xf32, #tpu.memory_space<vmem>>) attributes {dimension_semantics = [#tpu.dimension_semantics<parallel>], iteration_bounds = array<i64: 1>, scalar_prefetch = 0 : i64, scratch_operands = 0 : i64, tpu.core_type = #tpu.core_type<tc>, window_params = [{transform_indices = @transform_0, window_bounds = array<i64: 128, 8>}, {pipeline_mode = #tpu.pipeline_mode<synchronous>, transform_indices = @transform_1, window_bounds = array<i64: 512, 128>}, {pipeline_mode = #tpu.pipeline_mode<synchronous>, transform_indices = @transform_2, window_bounds = array<i64: 256, 136>}, {pipeline_mode = #tpu.pipeline_mode<synchronous>, transform_indices = @transform_3, window_bounds = array<i64: 8, 128>}, {pipeline_mode = #tpu.pipeline_mode<synchronous>, transform_indices = @transform_4, window_bounds = array<i64: 32, 1>}, {pipeline_mode = #tpu.pipeline_mode<synchronous>, transform_indices = @transform_5, window_bounds = array<i64: 1, 1>}, {transform_indices = @transform_6, window_bounds = array<i64: 16, 8>}]} {
    %c0 = arith.constant 0 : index
    %c0_0 = arith.constant 0 : index
    %0 = vector.load %arg2[%c0, %c0_0] : memref<512x128xbf16, #tpu.memory_space<vmem>>, vector<512x128xbf16>
    %c0_1 = arith.constant 0 : index
    %c0_2 = arith.constant 0 : index
    %1 = vector.load %arg1[%c0_1, %c0_2] : memref<128x8xbf16, #tpu.memory_space<vmem>>, vector<128x8xbf16>
    %cst = arith.constant dense<0.000000e+00> : vector<512x8xf32>
    %2 = tpu.matmul %0, %1, %cst {dimension_numbers = #tpu.dot_dimension_numbers<[1], [0], [0], [1], [0, 0, 1, 1], [], []>} : vector<512x128xbf16>, vector<128x8xbf16>, vector<512x8xf32> -> vector<512x8xf32>
    %3 = vector.extract_strided_slice %2 {offsets = [0, 0], sizes = [136, 8], strides = [1, 1]} : vector<512x8xf32> to vector<136x8xf32>
    %cst_3 = arith.constant 0.000000e+00 : f32
    %4 = vector.broadcast %cst_3 : f32 to vector<136x8xf32>
    %5 = arith.maximumf %3, %4 : vector<136x8xf32>
    %6 = arith.truncf %5 : vector<136x8xf32> to vector<136x8xbf16>
    %c0_4 = arith.constant 0 : index
    %c0_5 = arith.constant 0 : index
    %7 = vector.load %arg3[%c0_4, %c0_5] : memref<256x136xbf16, #tpu.memory_space<vmem>>, vector<256x136xbf16>
    %cst_6 = arith.constant dense<0.000000e+00> : vector<256x8xf32>
    %8 = tpu.matmul %7, %6, %cst_6 {dimension_numbers = #tpu.dot_dimension_numbers<[1], [0], [0], [1], [0, 0, 1, 1], [], []>} : vector<256x136xbf16>, vector<136x8xbf16>, vector<256x8xf32> -> vector<256x8xf32>
    %9 = vector.extract_strided_slice %8 {offsets = [0, 0], sizes = [128, 8], strides = [1, 1]} : vector<256x8xf32> to vector<128x8xf32>
    %10 = math.absf %9 : vector<128x8xf32>
    %11 = vector.extract_strided_slice %8 {offsets = [128, 0], sizes = [128, 8], strides = [1, 1]} : vector<256x8xf32> to vector<128x8xf32>
    %12 = math.absf %11 : vector<128x8xf32>
    %cst_7 = arith.constant 1.000000e-10 : f32
    %13 = vector.broadcast %cst_7 : f32 to vector<128x8xf32>
    %14 = arith.addf %12, %13 : vector<128x8xf32>
    %15 = vector.extract_strided_slice %2 {offsets = [136, 0], sizes = [32, 8], strides = [1, 1]} : vector<512x8xf32> to vector<32x8xf32>
    %16 = vector.extract_strided_slice %2 {offsets = [256, 0], sizes = [128, 8], strides = [1, 1]} : vector<512x8xf32> to vector<128x8xf32>
    %17 = arith.mulf %16, %10 : vector<128x8xf32>
    %18 = vector.extract_strided_slice %17 {offsets = [0, 0], sizes = [32, 8], strides = [1, 1]} : vector<128x8xf32> to vector<32x8xf32>
    %19 = vector.extract_strided_slice %17 {offsets = [32, 0], sizes = [32, 8], strides = [1, 1]} : vector<128x8xf32> to vector<32x8xf32>
    %20 = arith.addf %18, %19 : vector<32x8xf32>
    %21 = vector.extract_strided_slice %17 {offsets = [64, 0], sizes = [32, 8], strides = [1, 1]} : vector<128x8xf32> to vector<32x8xf32>
    %22 = arith.addf %20, %21 : vector<32x8xf32>
    %23 = vector.extract_strided_slice %17 {offsets = [96, 0], sizes = [32, 8], strides = [1, 1]} : vector<128x8xf32> to vector<32x8xf32>
    %24 = arith.addf %22, %23 : vector<32x8xf32>
    %25 = arith.addf %15, %24 : vector<32x8xf32>
    %cst_8 = arith.constant 0.000000e+00 : f32
    %26 = vector.broadcast %cst_8 : f32 to vector<32x8xf32>
    %27 = arith.cmpf ogt, %25, %26 : vector<32x8xf32>
    %cst_9 = arith.constant 0.000000e+00 : f32
    %28 = vector.broadcast %cst_9 : f32 to vector<32x8xf32>
    %29 = arith.minimumf %25, %28 : vector<32x8xf32>
    %30 = math.exp %29 : vector<32x8xf32>
    %cst_10 = arith.constant 1.000000e+00 : f32
    %31 = vector.broadcast %cst_10 : f32 to vector<32x8xf32>
    %32 = arith.subf %30, %31 : vector<32x8xf32>
    %33 = arith.select %27, %25, %32 : vector<32x8xi1>, vector<32x8xf32>
    %34 = vector.extract_strided_slice %2 {offsets = [384, 0], sizes = [128, 8], strides = [1, 1]} : vector<512x8xf32> to vector<128x8xf32>
    %35 = arith.mulf %34, %10 : vector<128x8xf32>
    %36 = vector.extract_strided_slice %35 {offsets = [0, 0], sizes = [32, 8], strides = [1, 1]} : vector<128x8xf32> to vector<32x8xf32>
    %37 = vector.extract_strided_slice %35 {offsets = [32, 0], sizes = [32, 8], strides = [1, 1]} : vector<128x8xf32> to vector<32x8xf32>
    %38 = arith.addf %36, %37 : vector<32x8xf32>
    %39 = vector.extract_strided_slice %35 {offsets = [64, 0], sizes = [32, 8], strides = [1, 1]} : vector<128x8xf32> to vector<32x8xf32>
    %40 = arith.addf %38, %39 : vector<32x8xf32>
    %41 = vector.extract_strided_slice %35 {offsets = [96, 0], sizes = [32, 8], strides = [1, 1]} : vector<128x8xf32> to vector<32x8xf32>
    %42 = arith.addf %40, %41 : vector<32x8xf32>
    %43 = arith.addf %15, %42 : vector<32x8xf32>
    %cst_11 = arith.constant 0.000000e+00 : f32
    %44 = vector.broadcast %cst_11 : f32 to vector<32x8xf32>
    %45 = arith.cmpf ogt, %43, %44 : vector<32x8xf32>
    %cst_12 = arith.constant 0.000000e+00 : f32
    %46 = vector.broadcast %cst_12 : f32 to vector<32x8xf32>
    %47 = arith.minimumf %43, %46 : vector<32x8xf32>
    %48 = math.exp %47 : vector<32x8xf32>
    %cst_13 = arith.constant 1.000000e+00 : f32
    %49 = vector.broadcast %cst_13 : f32 to vector<32x8xf32>
    %50 = arith.subf %48, %49 : vector<32x8xf32>
    %51 = arith.select %45, %43, %50 : vector<32x8xi1>, vector<32x8xf32>
    %52 = arith.subf %33, %51 : vector<32x8xf32>
    %53 = tpu.concatenate %52, %52, %52, %52 in 0 : vector<32x8xf32>, vector<32x8xf32>, vector<32x8xf32>, vector<32x8xf32> -> vector<128x8xf32>
    %54 = arith.mulf %53, %14 : vector<128x8xf32>
    %c0_14 = arith.constant 0 : index
    %c0_15 = arith.constant 0 : index
    %55 = vector.load %arg4[%c0_14, %c0_15] : memref<8x128xf32, #tpu.memory_space<vmem>>, vector<8x128xf32>
    %cst_16 = arith.constant dense<0.000000e+00> : vector<8x8xf32>
    %56 = tpu.matmul %55, %54, %cst_16 {dimension_numbers = #tpu.dot_dimension_numbers<[1], [0], [0], [1], [0, 0, 1, 1], [], []>} : vector<8x128xf32>, vector<128x8xf32>, vector<8x8xf32> -> vector<8x8xf32>
    %57 = vector.extract_strided_slice %2 {offsets = [200, 0], sizes = [4, 8], strides = [1, 1]} : vector<512x8xf32> to vector<4x8xf32>
    %58 = math.absf %57 : vector<4x8xf32>
    %cst_17 = arith.constant 1.000000e-10 : f32
    %59 = vector.broadcast %cst_17 : f32 to vector<4x8xf32>
    %60 = arith.addf %58, %59 : vector<4x8xf32>
    %61 = vector.extract_strided_slice %2 {offsets = [208, 0], sizes = [16, 8], strides = [1, 1]} : vector<512x8xf32> to vector<16x8xf32>
    %cst_18 = arith.constant 0.000000e+00 : f32
    %62 = vector.broadcast %cst_18 : f32 to vector<16x8xf32>
    %63 = arith.subf %62, %61 : vector<16x8xf32>
    %64 = math.exp %63 : vector<16x8xf32>
    %cst_19 = arith.constant 1.000000e+00 : f32
    %65 = vector.broadcast %cst_19 : f32 to vector<16x8xf32>
    %66 = arith.addf %65, %64 : vector<16x8xf32>
    %67 = tpu.reciprocal %66 {approx = true} : vector<16x8xf32> -> vector<16x8xf32>
    %68 = vector.extract_strided_slice %2 {offsets = [224, 0], sizes = [16, 8], strides = [1, 1]} : vector<512x8xf32> to vector<16x8xf32>
    %cst_20 = arith.constant 0.000000e+00 : f32
    %69 = vector.broadcast %cst_20 : f32 to vector<16x8xf32>
    %70 = arith.subf %69, %68 : vector<16x8xf32>
    %71 = math.exp %70 : vector<16x8xf32>
    %cst_21 = arith.constant 1.000000e+00 : f32
    %72 = vector.broadcast %cst_21 : f32 to vector<16x8xf32>
    %73 = arith.addf %72, %71 : vector<16x8xf32>
    %74 = tpu.reciprocal %73 {approx = true} : vector<16x8xf32> -> vector<16x8xf32>
    %75 = vector.extract_strided_slice %60 {offsets = [0, 0], sizes = [1, 8], strides = [1, 1]} : vector<4x8xf32> to vector<1x8xf32>
    %76 = vector.extract_strided_slice %67 {offsets = [0, 0], sizes = [4, 8], strides = [1, 1]} : vector<16x8xf32> to vector<4x8xf32>
    %77 = vector.broadcast %75 : vector<1x8xf32> to vector<4x8xf32>
    %78 = arith.mulf %77, %76 : vector<4x8xf32>
    %79 = vector.extract_strided_slice %74 {offsets = [0, 0], sizes = [4, 8], strides = [1, 1]} : vector<16x8xf32> to vector<4x8xf32>
    %80 = arith.mulf %78, %79 : vector<4x8xf32>
    %81 = vector.extract_strided_slice %60 {offsets = [1, 0], sizes = [1, 8], strides = [1, 1]} : vector<4x8xf32> to vector<1x8xf32>
    %82 = vector.extract_strided_slice %67 {offsets = [4, 0], sizes = [4, 8], strides = [1, 1]} : vector<16x8xf32> to vector<4x8xf32>
    %83 = vector.broadcast %81 : vector<1x8xf32> to vector<4x8xf32>
    %84 = arith.mulf %83, %82 : vector<4x8xf32>
    %85 = vector.extract_strided_slice %74 {offsets = [4, 0], sizes = [4, 8], strides = [1, 1]} : vector<16x8xf32> to vector<4x8xf32>
    %86 = arith.mulf %84, %85 : vector<4x8xf32>
    %87 = arith.addf %80, %86 : vector<4x8xf32>
    %88 = vector.extract_strided_slice %60 {offsets = [2, 0], sizes = [1, 8], strides = [1, 1]} : vector<4x8xf32> to vector<1x8xf32>
    %89 = vector.extract_strided_slice %67 {offsets = [8, 0], sizes = [4, 8], strides = [1, 1]} : vector<16x8xf32> to vector<4x8xf32>
    %90 = vector.broadcast %88 : vector<1x8xf32> to vector<4x8xf32>
    %91 = arith.mulf %90, %89 : vector<4x8xf32>
    %92 = vector.extract_strided_slice %74 {offsets = [8, 0], sizes = [4, 8], strides = [1, 1]} : vector<16x8xf32> to vector<4x8xf32>
    %93 = arith.mulf %91, %92 : vector<4x8xf32>
    %94 = arith.addf %87, %93 : vector<4x8xf32>
    %95 = vector.extract_strided_slice %60 {offsets = [3, 0], sizes = [1, 8], strides = [1, 1]} : vector<4x8xf32> to vector<1x8xf32>
    %96 = vector.extract_strided_slice %67 {offsets = [12, 0], sizes = [4, 8], strides = [1, 1]} : vector<16x8xf32> to vector<4x8xf32>
    %97 = vector.broadcast %95 : vector<1x8xf32> to vector<4x8xf32>
    %98 = arith.mulf %97, %96 : vector<4x8xf32>
    %99 = vector.extract_strided_slice %74 {offsets = [12, 0], sizes = [4, 8], strides = [1, 1]} : vector<16x8xf32> to vector<4x8xf32>
    %100 = arith.mulf %98, %99 : vector<4x8xf32>
    %101 = arith.addf %94, %100 : vector<4x8xf32>
    %cst_22 = arith.constant 1.000000e+00 : f32
    %102 = vector.broadcast %cst_22 : f32 to vector<4x8xf32>
    %103 = arith.subf %101, %102 : vector<4x8xf32>
    %104 = vector.extract_strided_slice %56 {offsets = [0, 0], sizes = [4, 8], strides = [1, 1]} : vector<8x8xf32> to vector<4x8xf32>
    %105 = arith.mulf %104, %103 : vector<4x8xf32>
    %cst_23 = arith.constant dense<0.000000e+00> : vector<8xf32>
    %106 = vector.multi_reduction <add>, %105, %cst_23 [0] : vector<4x8xf32> to vector<8xf32>
    %107 = vector.shape_cast %106 : vector<8xf32> to vector<1x8xf32>
    %108 = vector.extract_strided_slice %2 {offsets = [248, 0], sizes = [8, 8], strides = [1, 1]} : vector<512x8xf32> to vector<8x8xf32>
    %109 = vector.extract_strided_slice %2 {offsets = [240, 0], sizes = [1, 8], strides = [1, 1]} : vector<512x8xf32> to vector<1x8xf32>
    %110 = arith.subf %107, %109 : vector<1x8xf32>
    %111 = vector.broadcast %110 : vector<1x8xf32> to vector<8x8xf32>
    %112 = arith.addf %108, %111 : vector<8x8xf32>
    %c0_24 = arith.constant 0 : index
    %c0_25 = arith.constant 0 : index
    %113 = vector.load %arg7[%c0_24, %c0_25] : memref<16x8xf32, #tpu.memory_space<vmem>>, vector<8x8xf32>
    tpu.vector_store %arg7[%c0_24, %c0_25], %112 {strides = array<i32>} : memref<16x8xf32, #tpu.memory_space<vmem>>, vector<8x8xf32>,
    %114 = arith.mulf %10, %10 : vector<128x8xf32>
    %cst_26 = arith.constant dense<0.000000e+00> : vector<8xf32>
    %115 = vector.multi_reduction <add>, %114, %cst_26 [0] : vector<128x8xf32> to vector<8xf32>
    %116 = vector.shape_cast %115 : vector<8xf32> to vector<1x8xf32>
    %117 = arith.mulf %15, %15 : vector<32x8xf32>
    %cst_27 = arith.constant dense<0.000000e+00> : vector<8xf32>
    %118 = vector.multi_reduction <add>, %117, %cst_27 [0] : vector<32x8xf32> to vector<8xf32>
    %119 = vector.shape_cast %118 : vector<8xf32> to vector<1x8xf32>
    %120 = arith.mulf %14, %14 : vector<128x8xf32>
    %cst_28 = arith.constant dense<0.000000e+00> : vector<8xf32>
    %121 = vector.multi_reduction <add>, %120, %cst_28 [0] : vector<128x8xf32> to vector<8xf32>
    %122 = vector.shape_cast %121 : vector<8xf32> to vector<1x8xf32>
    %cst_29 = arith.constant 0.000000e+00 : f32
    %123 = vector.broadcast %cst_29 : f32 to vector<5x8xf32>
    %124 = tpu.concatenate %116, %119, %122, %123 in 0 : vector<1x8xf32>, vector<1x8xf32>, vector<1x8xf32>, vector<5x8xf32> -> vector<8x8xf32>
    %c8 = arith.constant 8 : index
    %c0_30 = arith.constant 0 : index
    %125 = vector.load %arg7[%c8, %c0_30] : memref<16x8xf32, #tpu.memory_space<vmem>>, vector<8x8xf32>
    tpu.vector_store %arg7[%c8, %c0_30], %124 {strides = array<i32>} : memref<16x8xf32, #tpu.memory_space<vmem>>, vector<8x8xf32>,
    return
  }
  func.func @transform_0(%arg0: i32) -> (i32, i32) {
    %c0_i32 = arith.constant 0 : i32
    %c0_i32_0 = arith.constant 0 : i32
    return %c0_i32, %arg0 : i32, i32
  }
  func.func @transform_1(%arg0: i32) -> (i32, i32) {
    %c0_i32 = arith.constant 0 : i32
    %c0_i32_0 = arith.constant 0 : i32
    %c0_i32_1 = arith.constant 0 : i32
    return %c0_i32, %c0_i32_0 : i32, i32
  }
  func.func @transform_2(%arg0: i32) -> (i32, i32) {
    %c0_i32 = arith.constant 0 : i32
    %c0_i32_0 = arith.constant 0 : i32
    %c0_i32_1 = arith.constant 0 : i32
    return %c0_i32, %c0_i32_0 : i32, i32
  }
  func.func @transform_3(%arg0: i32) -> (i32, i32) {
    %c0_i32 = arith.constant 0 : i32
    %c0_i32_0 = arith.constant 0 : i32
    %c0_i32_1 = arith.constant 0 : i32
    return %c0_i32, %c0_i32_0 : i32, i32
  }
  func.func @transform_4(%arg0: i32) -> (i32, i32) {
    %c0_i32 = arith.constant 0 : i32
    %c0_i32_0 = arith.constant 0 : i32
    %c0_i32_1 = arith.constant 0 : i32
    return %c0_i32, %c0_i32_0 : i32, i32
  }
  func.func @transform_5(%arg0: i32) -> (i32, i32) {
    %c0_i32 = arith.constant 0 : i32
    %c0_i32_0 = arith.constant 0 : i32
    %c0_i32_1 = arith.constant 0 : i32
    return %c0_i32, %c0_i32_0 : i32, i32
  }
  func.func @transform_6(%arg0: i32) -> (i32, i32) {
    %c0_i32 = arith.constant 0 : i32
    %c0_i32_0 = arith.constant 0 : i32
    return %c0_i32, %arg0 : i32, i32
  }
}

</mosaic_0001>

<bundles_post_ra>
// kernel: tpu_custom_call.1
= control target key start
LH: loop header
LB: loop body
LE: loop exit
PB: predicated region body
PF: predicated region fallthrough
CT: control target
= control target key end

     0   :  { %v1921_v24 = vmov 0   ;;  %vm833_vm0 = vcmask 64512   ;;  %vm882_vm1 = vcmask 1043456   ;;  %vm1923_vm2 = vmmov 0   ;;  %s2487_s0 = inlined_call_operand.vmem [shape: bf16[128,8], index: 0, kind: input, shape index: {}]   ;;  %s2488_s4 = inlined_call_operand.vmem [shape: f32[32,1], index: 4, kind: input, shape index: {}]   ;;  %s2489_s5 = inlined_call_operand.<no memory space> [shape: f32[1,1], index: 5, kind: input, shape index: {}]   ;;  %s2490_s1 = inlined_call_operand.vmem [shape: bf16[512,128], index: 1, kind: input, shape index: {}]   ;;  %s2491_s2 = inlined_call_operand.vmem [shape: bf16[256,136], index: 2, kind: input, shape index: {}]   ;;  %s2492_s3 = inlined_call_operand.vmem [shape: f32[8,128], index: 3, kind: input, shape index: {}]   ;;  %s2493_s6 = inlined_call_operand.vmem [shape: f32[16,8], index: 6, kind: output, shape index: {}]  }
   0x1   :  { %v1801_v0 = vld [vmem:[%s2487_s0] sm:$0xff]   ;;  %v1802_v1 = vld [vmem:[%s2487_s0 + $0x8] sm:$0xff]   ;;  %v1803_v2 = vld [vmem:[%s2487_s0 + $0x10] sm:$0xff]   ;;  %886 = vmatprep.subr.bf16.mxu1 %v1921_v24  ;;  %vm1493_vm7 = vcmask 1040384   ;;  %vm1495_vm12 = vcmask 1041408   ;;  %vm1497_vm13 = vcmask 1042432  }
   0x2   :  { %1658 = vmatprep.subr.bf16.mxu0 %v1801_v0  ;;  %v1804_v3 = vld [vmem:[%s2487_s0 + $0x18] sm:$0xff]   ;;  %v1809_v4 = vld [vmem:[%s2490_s1] sm:$0xff]   ;;  %v1806_v6 = vld [vmem:[%s2487_s0 + $0x28] sm:$0xff]   ;;  %vm1355_vm14 = vcmask 60416  }
   0x3   :  { %1659 = vmatpush3.bf16.msra.mxu0 %v1801_v0  ;;  %1674 = vmatprep.mubr.bf16.mxu0 %v1809_v4  ;;  %v1805_v5 = vld [vmem:[%s2487_s0 + $0x20] sm:$0xff]   ;;  %v1807_v7 = vld [vmem:[%s2487_s0 + $0x30] sm:$0xff]   ;;  %v1808_v8 = vld [vmem:[%s2487_s0 + $0x38] sm:$0xff]  }
   0x4   :  { %1660 = vmatprep.subr.bf16.mxu0 %v1802_v1  ;;  %v1810_v9 = vld [vmem:[%s2490_s1 + $0x8] sm:$0xff]   ;;  %v1811_v10 = vld [vmem:[%s2490_s1 + $0x10] sm:$0xff]   ;;  %v1812_v11 = vld [vmem:[%s2490_s1 + $0x18] sm:$0xff]  }
   0x5   :  { %v1813_v12 = vld [vmem:[%s2490_s1 + $0x20] sm:$0xff]   ;;  %v1814_v13 = vld [vmem:[%s2490_s1 + $0x28] sm:$0xff]   ;;  %v1815_v14 = vld [vmem:[%s2490_s1 + $0x30] sm:$0xff]  }
   0x6   :  { %v1816_v15 = vld [vmem:[%s2490_s1 + $0x38] sm:$0xff]   ;;  %v1817_v16 = vld [vmem:[%s2490_s1 + $0x40] sm:$0xff]   ;;  %v1818_v17 = vld [vmem:[%s2490_s1 + $0x48] sm:$0xff]  }
   0x7   :  { %1661 = vmatpush3.bf16.msra.mxu0 %v1802_v1  ;;  %v1819_v18 = vld [vmem:[%s2490_s1 + $0x50] sm:$0xff]   ;;  %v1820_v19 = vld [vmem:[%s2490_s1 + $0x58] sm:$0xff]   ;;  %v1821_v20 = vld [vmem:[%s2490_s1 + $0x60] sm:$0xff]  }
   0x8   :  { %1662 = vmatprep.subr.bf16.mxu0 %v1803_v2  ;;  %v1822_v21 = vld [vmem:[%s2490_s1 + $0x68] sm:$0xff]   ;;  %v1823_v22 = vld [vmem:[%s2490_s1 + $0x70] sm:$0xff]   ;;  %v1824_v23 = vld [vmem:[%s2490_s1 + $0x78] sm:$0xff]  }
   0x9   :  { %v1825_v25 = vld [vmem:[%s2490_s1 + $0x80] sm:$0xff]   ;;  %v1826_v26 = vld [vmem:[%s2490_s1 + $0x88] sm:$0xff]   ;;  %v1827_v27 = vld [vmem:[%s2490_s1 + $0x90] sm:$0xff]  }
   0xa   :  { %v1828_v28 = vld [vmem:[%s2490_s1 + $0x98] sm:$0xff]   ;;  %v1829_v29 = vld [vmem:[%s2490_s1 + $0xa0] sm:$0xff]   ;;  %v1830_v30 = vld [vmem:[%s2490_s1 + $0xa8] sm:$0xff]  }
   0xb   :  { %1663 = vmatpush3.bf16.msra.mxu0 %v1803_v2  ;;  %v1831_v31 = vld [vmem:[%s2490_s1 + $0xb0] sm:$0xff]   ;;  %v1832_v32 = vld [vmem:[%s2490_s1 + $0xb8] sm:$0xff]   ;;  %v1835_v33 = vld [vmem:[%s2491_s2 + $0x4] ss:$8 sps:$4 sm:$0xff]  }
   0xc   :  { %1664 = vmatprep.subr.bf16.mxu0 %v1804_v3  ;;  %v1836_v34 = vld [vmem:[%s2490_s1 + $0xc0] sm:$0xff]   ;;  %1576 = vmatprep.mubr.msk.bf16.mxu1 %vm833_vm0, %v1835_v33  ;;  %v1837_v35 = vld [vmem:[%s2490_s1 + $0xc8] sm:$0xff]   ;;  %v1843_v36 = vld [vmem:[%s2490_s1 + $0xd0] sm:$0xff]  }
   0xd   :  { %v1845_v37 = vld [vmem:[%s2490_s1 + $0xd8] sm:$0xff]   ;;  %v1851_v38 = vld [vmem:[%s2490_s1 + $0xe0] sm:$0xff]   ;;  %v1853_v39 = vld [vmem:[%s2490_s1 + $0xe8] sm:$0xff]  }
   0xe   :  { %v1857_v40 = vld [vmem:[%s2490_s1 + $0xf0] sm:$0xff]   ;;  %v1858_v41 = vld [vmem:[%s2490_s1 + $0xf8] sm:$0xff]  }
   0xf   :  { %1665 = vmatpush3.bf16.msra.mxu0 %v1804_v3 }
  0x10   :  { %1666 = vmatprep.subr.bf16.mxu0 %v1805_v5 }
  0x13   :  { %1667 = vmatpush3.bf16.msra.mxu0 %v1805_v5 }
  0x14   :  { %1668 = vmatprep.subr.bf16.mxu0 %v1806_v6 }
  0x17   :  { %1669 = vmatpush3.bf16.msra.mxu0 %v1806_v6 }
  0x18   :  { %1670 = vmatprep.subr.bf16.mxu0 %v1807_v7 }
  0x1b   :  { %1671 = vmatpush3.bf16.msra.mxu0 %v1807_v7 }
  0x1c   :  { %1672 = vmatprep.subr.bf16.mxu0 %v1808_v8 }
  0x1f   :  { %1673 = vmatpush3.bf16.msra.mxu0 %v1808_v8 }
  0x22   :  { %1675 = vmatmul.mubr.bf16.vlgmr.msra.gmra.mrb[0].mxu0 %v1810_v9 }
  0x23   :  { %1678 = vmatprep.mubr.bf16.mxu0 %v1811_v10 }
  0x2a   :  { %1679 = vmatmul.mubr.bf16.gmra.mrb[4].mxu0 %v1812_v11 }
  0x2b   :  { %1682 = vmatprep.mubr.bf16.mxu0 %v1813_v12 }
  0x32   :  { %1683 = vmatmul.mubr.bf16.gmra.mrb[8].mxu0 %v1814_v13 }
  0x33   :  { %1686 = vmatprep.mubr.bf16.mxu0 %v1815_v14 }
  0x3a   :  { %1687 = vmatmul.mubr.bf16.gmra.mrb[12].mxu0 %v1816_v15 }
  0x3b   :  { %1690 = vmatprep.mubr.bf16.mxu0 %v1817_v16 }
  0x42   :  { %1691 = vmatmul.mubr.bf16.gmra.mrb[16].mxu0 %v1818_v17 }
  0x43   :  { %1694 = vmatprep.mubr.bf16.mxu0 %v1819_v18 }
  0x4a   :  { %1695 = vmatmul.mubr.bf16.gmra.mrb[20].mxu0 %v1820_v19 }
  0x4b   :  { %1698 = vmatprep.mubr.bf16.mxu0 %v1821_v20 }
  0x52   :  { %1699 = vmatmul.mubr.bf16.gmra.mrb[24].mxu0 %v1822_v21 }
  0x53   :  { %1702 = vmatprep.mubr.bf16.mxu0 %v1823_v22 }
  0x5a   :  { %1703 = vmatmul.mubr.bf16.gmra.mrb[28].mxu0 %v1824_v23 }
  0x5b   :  { %1706 = vmatprep.mubr.bf16.mxu0 %v1825_v25 }
  0x62   :  { %1707 = vmatmul.mubr.bf16.gmra.mrb[32].mxu0 %v1826_v26 }
  0x63   :  { %1710 = vmatprep.mubr.bf16.mxu0 %v1827_v27 }
  0x6a   :  { %1711 = vmatmul.mubr.bf16.gmra.mrb[36].mxu0 %v1828_v28 }
  0x6b   :  { %1714 = vmatprep.mubr.bf16.mxu0 %v1829_v29 }
  0x72   :  { %1715 = vmatmul.mubr.bf16.gmra.mrb[40].mxu0 %v1830_v30 }
  0x73   :  { %1718 = vmatprep.mubr.bf16.mxu0 %v1831_v31 }
  0x7a   :  { %1719 = vmatmul.mubr.bf16.gmra.mrb[44].mxu0 %v1832_v32  ;;  %v1833_v32 = vld [vmem:[%s2491_s2] ss:$8 sps:$4 sm:$0xff]  }
  0x7b   :  { %1722 = vmatprep.mubr.bf16.mxu0 %v1836_v34 }
  0x82   :  { %1723 = vmatmul.mubr.bf16.gmra.mrb[48].mxu0 %v1837_v35  ;;  %v1838_v35 = vld [vmem:[%s2491_s2 + $0x14] ss:$8 sps:$4 sm:$0xff]  }
  0x83   :  { %1726 = vmatprep.mubr.bf16.mxu0 %v1843_v36 }
  0x8a   :  { %1727 = vmatmul.mubr.bf16.gmra.mrb[52].mxu0 %v1845_v37 }
  0x8b   :  { %1730 = vmatprep.mubr.bf16.mxu0 %v1851_v38 }
  0x92   :  { %1731 = vmatmul.mubr.bf16.gmra.mrb[56].mxu0 %v1853_v39 }
  0x93   :  { %1734 = vmatprep.mubr.bf16.mxu0 %v1857_v40 }
  0x9a   :  { %1735 = vmatmul.mubr.bf16.gmra.mrb[60].mxu0 %v1858_v41 }
  0xf5   :  { %v1676_v42 = vpop.f32.mrb[0].mxu0 }
  0xf6   :  { %v380_v43 = vpop.f32.mrb[1].mxu0  ;;  %v633_v45 = vmax.f32 %v1676_v42, 0.0  ;;  %v1840_v42 = vld [vmem:[%s2491_s2 + $0x10] ss:$8 sps:$4 sm:$0xff]  }
  0xf7   :  { %v1677_v44 = vpop.f32.mrb[2].mxu0  ;;  %v631_v48 = vmax.f32 %v380_v43, 0.0  ;;  %v1841_v43 = vld [vmem:[%s2491_s2 + $0x24] ss:$8 sps:$4 sm:$0xff]  }
  0xf8   :  { %v634_v46 = vmax.f32 %v1677_v44, 0.0  ;;  %v383_v47 = vpop.f32.mrb[3].mxu0 }
  0xf9   :  { %v632_v49 = vmax.f32 %v383_v47, 0.0 }
  0xfa   :  { %v649_v50 = vpack.c.bf16 %v634_v46, %v633_v45 }
  0xfb   :  { %v648_v51 = vpack.c.bf16 %v632_v49, %v631_v48 }
  0xfd   :  { %v1680_v52 = vpop.f32.mrb[4].mxu0  ;;  %887 = vmatpush1.bf16.msra.mxu1 %v648_v51  ;;  %v1846_v51 = vld [vmem:[%s2491_s2 + $0x34] ss:$8 sps:$4 sm:$0xff]  }
  0xfe   :  { %v396_v53 = vpop.f32.mrb[5].mxu0  ;;  %888 = vmatprep.subr.bf16.mxu1 %v1921_v24  ;;  %v637_v55 = vmax.f32 %v1680_v52, 0.0 }
  0xff   :  { %v1681_v54 = vpop.f32.mrb[6].mxu0  ;;  %v635_v58 = vmax.f32 %v396_v53, 0.0 }
 0x100   :  { %v638_v56 = vmax.f32 %v1681_v54, 0.0  ;;  %v399_v57 = vpop.f32.mrb[7].mxu0 }
 0x101   :  { %v636_v59 = vmax.f32 %v399_v57, 0.0  ;;  %889 = vmatpush1.bf16.msra.mxu1 %v649_v50  ;;  %v1844_v50 = vld [vmem:[%s2491_s2 + $0x20] ss:$8 sps:$4 sm:$0xff]  }
 0x102   :  { %v651_v60 = vpack.c.bf16 %v638_v56, %v637_v55  ;;  %890 = vmatprep.subr.bf16.mxu1 %v1921_v24  ;;  %v1320_v56 = vlaneseq }
 0x103   :  { %v650_v61 = vpack.c.bf16 %v636_v59, %v635_v58  ;;  %v1848_v58 = vld [vmem:[%s2491_s2 + $0x30] ss:$8 sps:$4 sm:$0xff]   ;;  %v1849_v59 = vld [vmem:[%s2491_s2 + $0x44] ss:$8 sps:$4 sm:$0xff]  }
 0x105   :  { %v1684_v62 = vpop.f32.mrb[8].mxu0  ;;  %891 = vmatpush1.bf16.msra.mxu1 %v650_v61 }
 0x106   :  { %v412_v63 = vpop.f32.mrb[9].mxu0  ;;  %892 = vmatprep.subr.bf16.mxu1 %v1921_v24  ;;  %v641_v1 = vmax.f32 %v1684_v62, 0.0  ;;  %v2146_v62 = vshrl.u32 %v1320_v56, 7  ;;  %v1876_v56 = vld [vmem:[%s2491_s2 + $0xb0] ss:$8 sps:$4 sm:$0xff]  }
 0x107   :  { %v1685_v0 = vpop.f32.mrb[10].mxu0  ;;  %v639_v4 = vmax.f32 %v412_v63, 0.0 }
 0x108   :  { %v642_v2 = vmax.f32 %v1685_v0, 0.0  ;;  %v415_v3 = vpop.f32.mrb[11].mxu0  ;;  %v1328_v0 = vsub.s32 1, %v2146_v62 }
 0x109   :  { %v640_v5 = vmax.f32 %v415_v3, 0.0  ;;  %893 = vmatpush1.bf16.msra.mxu1 %v651_v60 }
 0x10a   :  { %v653_v6 = vpack.c.bf16 %v642_v2, %v641_v1  ;;  %894 = vmatprep.subr.bf16.mxu1 %v1921_v24  ;;  %v1852_v1 = vld [vmem:[%s2491_s2 + $0x40] ss:$8 sps:$4 sm:$0xff]   ;;  %v1854_v2 = vld [vmem:[%s2491_s2 + $0x54] ss:$8 sps:$4 sm:$0xff]  }
 0x10b   :  { %v652_v7 = vpack.c.bf16 %v640_v5, %v639_v4 }
 0x10d   :  { %v1688_v8 = vpop.f32.mrb[12].mxu0  ;;  %895 = vmatpush1.bf16.msra.mxu1 %v652_v7  ;;  %v1859_v7 = vld [vmem:[%s2491_s2 + $0x64] ss:$8 sps:$4 sm:$0xff]  }
 0x10e   :  { %v428_v9 = vpop.f32.mrb[13].mxu0  ;;  %896 = vmatprep.subr.bf16.mxu1 %v1921_v24  ;;  %v645_v11 = vmax.f32 %v1688_v8, 0.0  ;;  %v1861_v8 = vld [vmem:[%s2491_s2 + $0x60] ss:$8 sps:$4 sm:$0xff]  }
 0x10f   :  { %v1689_v10 = vpop.f32.mrb[14].mxu0  ;;  %v643_v14 = vmax.f32 %v428_v9, 0.0  ;;  %v1862_v9 = vld [vmem:[%s2491_s2 + $0x74] ss:$8 sps:$4 sm:$0xff]  }
 0x110   :  { %v646_v12 = vmax.f32 %v1689_v10, 0.0  ;;  %v431_v13 = vpop.f32.mrb[15].mxu0 }
 0x111   :  { %v644_v15 = vmax.f32 %v431_v13, 0.0  ;;  %897 = vmatpush1.bf16.msra.mxu1 %v653_v6  ;;  %v1856_v6 = vld [vmem:[%s2491_s2 + $0x50] ss:$8 sps:$4 sm:$0xff]   ;;  %v1865_v13 = vld [vmem:[%s2491_s2 + $0x84] ss:$8 sps:$4 sm:$0xff]  }
 0x112   :  { %v655_v16 = vpack.c.bf16 %v646_v12, %v645_v11  ;;  %898 = vmatprep.subr.bf16.mxu1 %v1921_v24  ;;  %v1864_v11 = vld [vmem:[%s2491_s2 + $0x70] ss:$8 sps:$4 sm:$0xff]  }
 0x113   :  { %v654_v17 = vpack.c.bf16 %v644_v15, %v643_v14 }
 0x115   :  { %v2091_v18 = vpop.f32.mrb[16].mxu0  ;;  %899 = vmatpush1.bf16.msra.mxu1 %v654_v17 }
 0x116   :  { %v444_v19 = vpop.f32.mrb[17].mxu0  ;;  %900 = vmatprep.subr.bf16.mxu1 %v1921_v24  ;;  %v1424_v20 = vmul.f32 %v2091_v18, %v2091_v18 }
 0x117   :  { %v647_v21 = vmax.f32 %v444_v19, 0.0  ;;  %v2096_v22 = vpop.f32.mrb[18].mxu0 }
 0x118   :  { %v2098_v23 = vpop.f32.mrb[19].mxu0  ;;  %v1425_v26 = vmul.f32 %v2096_v22, %v2096_v22  ;;  %v1428_v28 = vsel %vm833_vm0, %v1424_v20, 0.0 }
 0x119   :  { %v656_v25 = vpack.c.bf16 %v647_v21, %v647_v21  ;;  %v1423_v27 = vmul.f32 %v2098_v23, %v2098_v23  ;;  %901 = vmatpush1.bf16.msra.mxu1 %v655_v16 }
 0x11a   :  { %902 = vmatprep.subr.bf16.mxu1 %v1921_v24  ;;  %v1430_v33 = vsel %vm833_vm0, %v1425_v26, 0.0  ;;  %v1867_v26 = vld [vmem:[%s2491_s2 + $0x80] ss:$8 sps:$4 sm:$0xff]  }
 0x11b   :  { %v1427_v29 = vsel %vm833_vm0, %v1423_v27, 0.0  ;;  %v884_v30 = vsel %vm882_vm1, %v656_v25, 0 }
 0x11c   :  { %v1429_v31 = vadd.f32 %v1428_v28, %v1427_v29  ;;  %v1868_v28 = vld [vmem:[%s2491_s2 + $0x94] ss:$8 sps:$4 sm:$0xff]  }
 0x11d   :  { %v1696_v34 = vpop.f32.mrb[20].mxu0  ;;  %903 = vmatpush1.bf16.msra.mxu1 %v884_v30 }
 0x11e   :  { %v2114_v36 = vpop.f32.mrb[21].mxu0  ;;  %v1431_v24 = vadd.f32 %v1430_v33, %v1429_v31 }
 0x11f   :  { %v1426_v37 = vmul.f32 %v2114_v36, %v2114_v36  ;;  %v1697_v38 = vpop.f32.mrb[22].mxu0 }
 0x120   :  { %919 = vmatmul.mubr.bf16.vlgmr.msra.gmra.mrb[0].mxu1 %v1833_v32  ;;  %v463_v39 = vpop.f32.mrb[23].mxu0  ;;  %v1870_v32 = vld [vmem:[%s2491_s2 + $0x90] ss:$8 sps:$4 sm:$0xff]  }
 0x121   :  { %v1432_v40 = vsel %vm833_vm0, %v1426_v37, 0.0  ;;  %1577 = vmatprep.mubr.msk.bf16.mxu1 %vm833_vm0, %v1838_v35  ;;  %v1871_v35 = vld [vmem:[%s2491_s2 + $0xa4] ss:$8 sps:$4 sm:$0xff]  }
 0x122   :  { %v2120_v41 = vadd.f32 %v1432_v40, %v1431_v24 }
 0x125   :  { %v1700_v44 = vpop.f32.mrb[24].mxu0 }
 0x126   :  { %v1300_v45 = vsub.f32 0.0, %v1700_v44  ;;  %v473_v46 = vpop.f32.mrb[25].mxu0  ;;  %v1873_v44 = vld [vmem:[%s2491_s2 + $0xa0] ss:$8 sps:$4 sm:$0xff]  }
 0x127   :  { %v1701_v47 = vpop.f32.mrb[26].mxu0 }
 0x128   :  { %927 = vmatmul.mubr.bf16.gmra.mrb[4].mxu1 %v1840_v42  ;;  %v1302_v48 = vmul.f32 1.442695, %v1300_v45  ;;  %v475_v49 = vpop.f32.mrb[27].mxu0  ;;  %v1301_v14 = vsub.f32 0.0, %v1701_v47  ;;  %v1874_v47 = vld [vmem:[%s2491_s2 + $0xb4] ss:$8 sps:$4 sm:$0xff]  }
 0x129   :  { %1578 = vmatprep.mubr.msk.bf16.mxu1 %vm833_vm0, %v1841_v43  ;;  %v1298_v61 = vand.u32 2147483647, %v475_v49 }
 0x12a   :  { %1889 = vpow2.f32 %v1302_v48  ;;  %v1304_v21 = vmul.f32 1.442695, %v1301_v14 }
 0x12b   :  { %v2149_v63 = vadd.f32 1e-10, %v1298_v61 }
 0x12d   :  { %v2135_v52 = vpop.f32.mrb[28].mxu0  ;;  %v1329_v3 = vrot.slane %v2149_v63, %v1328_v0 }
 0x12e   :  { %v488_v53 = vpop.f32.mrb[29].mxu0 }
 0x12f   :  { %v2137_v54 = vpop.f32.mrb[30].mxu0  ;;  %v1310_v10 = vsub.f32 0.0, %v488_v53  ;;  %v1338_v53 = vsub.s32 2, %v2146_v62 }
 0x130   :  { %935 = vmatmul.mubr.bf16.gmra.mrb[8].mxu1 %v1844_v50  ;;  %v491_v55 = vpop.f32.mrb[31].mxu0 }
 0x131   :  { %1579 = vmatprep.mubr.msk.bf16.mxu1 %vm833_vm0, %v1846_v51  ;;  %v1312_v17 = vmul.f32 1.442695, %v1310_v10  ;;  %v1311_v19 = vsub.f32 0.0, %v491_v55  ;;  %v1322_v51 = vsub.s32 0, %v2146_v62  ;;  %v1345_v55 = vsub.s32 3, %v2146_v62 }
 0x133   :  { %v1314_v25 = vmul.f32 1.442695, %v1311_v19 }
 0x134   :  { %v1890_v57 = vpop.eup %1889 }
 0x135   :  { %v1306_v60 = vadd.f32 1.0, %v1890_v57  ;;  %v2182_v12 = vpop.f32.mrb[32].mxu0 }
 0x136   :  { %v2187_v15 = vpop.f32.mrb[33].mxu0 }
 0x137   :  { %1891 = vrcp.f32 %v1306_v60  ;;  %v2189_v16 = vpop.f32.mrb[34].mxu0 }
 0x138   :  { %943 = vmatmul.mubr.bf16.gmra.mrb[12].mxu1 %v1848_v58  ;;  %v2191_v20 = vpop.f32.mrb[35].mxu0  ;;  %1893 = vpow2.f32 %v1312_v17  ;;  %v1877_v58 = vld [vmem:[%s2491_s2 + $0xc4] ss:$8 sps:$4 sm:$0xff]   ;;  %v1879_v17 = vld [vmem:[%s2491_s2 + $0xc0] ss:$8 sps:$4 sm:$0xff]  }
 0x139   :  { %1580 = vmatprep.mubr.msk.bf16.mxu1 %vm833_vm0, %v1849_v59  ;;  %1895 = vpow2.f32 %v1304_v21  ;;  %v1323_v59 = vrot.slane %v2149_v63, %v1322_v51 }
 0x13a   :  { %1897 = vpow2.f32 %v1314_v25 }
 0x13d   :  { %v2197_v27 = vpop.f32.mrb[36].mxu0 }
 0x13e   :  { %v2202_v29 = vpop.f32.mrb[37].mxu0 }
 0x13f   :  { %v2204_v30 = vpop.f32.mrb[38].mxu0 }
 0x140   :  { %951 = vmatmul.mubr.bf16.gmra.mrb[16].mxu1 %v1852_v1  ;;  %v2206_v31 = vpop.f32.mrb[39].mxu0  ;;  %v1339_v1 = vrot.slane %v2149_v63, %v1338_v53 }
 0x141   :  { %v2159_v4 = vpop.eup %1891  ;;  %1581 = vmatprep.mubr.msk.bf16.mxu1 %vm833_vm0, %v1854_v2  ;;  %v1346_v2 = vrot.slane %v2149_v63, %v1345_v55  ;;  %v1880_v63 = vld [vmem:[%s2491_s2 + $0xd4] ss:$8 sps:$4 sm:$0xff]  }
 0x142   :  { %v2163_v5 = vmul.f32 %v2159_v4, %v1329_v3  ;;  %v1894_v34 = vpop.eup %1893 }
 0x143   :  { %v1896_v38 = vpop.eup %1895  ;;  %v1316_v40 = vadd.f32 1.0, %v1894_v34  ;;  %v1883_v34 = vld [vmem:[%s2491_s2 + $0xe4] ss:$8 sps:$4 sm:$0xff]  }
 0x144   :  { %v1898_v42 = vpop.eup %1897  ;;  %v1307_v43 = vadd.f32 1.0, %v1896_v38 }
 0x145   :  { %v2212_v33 = vpop.f32.mrb[40].mxu0  ;;  %1899 = vrcp.f32 %v1316_v40  ;;  %v1317_v45 = vadd.f32 1.0, %v1898_v42  ;;  %v1885_v42 = vld [vmem:[%s2491_s2 + $0xe0] ss:$8 sps:$4 sm:$0xff]  }
 0x146   :  { %v2217_v24 = vpop.f32.mrb[41].mxu0  ;;  %1901 = vrcp.f32 %v1307_v43  ;;  %v1886_v43 = vld [vmem:[%s2491_s2 + $0xf4] ss:$8 sps:$4 sm:$0xff]  }
 0x147   :  { %v2219_v37 = vpop.f32.mrb[42].mxu0  ;;  %1903 = vrcp.f32 %v1317_v45 }
 0x148   :  { %959 = vmatmul.mubr.bf16.gmra.mrb[20].mxu1 %v1856_v6  ;;  %v2221_v39 = vpop.f32.mrb[43].mxu0 }
 0x149   :  { %1582 = vmatprep.mubr.msk.bf16.mxu1 %vm833_vm0, %v1859_v7  ;;  %v1324_v7 = vmul.f32 %v2159_v4, %v1323_v59 }
 0x14d   :  { %v2227_v46 = vpop.f32.mrb[44].mxu0 }
 0x14e   :  { %v2232_v48 = vpop.f32.mrb[45].mxu0 }
 0x14f   :  { %v2234_v49 = vpop.f32.mrb[46].mxu0  ;;  %v1900_v61 = vpop.eup %1899 }
 0x150   :  { %967 = vmatmul.mubr.bf16.gmra.mrb[24].mxu1 %v1861_v8  ;;  %v2236_v50 = vpop.f32.mrb[47].mxu0  ;;  %v1902_v6 = vpop.eup %1901  ;;  %v1331_v8 = vmul.f32 %v1900_v61, %v2163_v5  ;;  %v1325_v10 = vmul.f32 %v1900_v61, %v1324_v7 }
 0x151   :  { %1583 = vmatprep.mubr.msk.bf16.mxu1 %vm833_vm0, %v1862_v9  ;;  %v1904_v9 = vpop.eup %1903  ;;  %v1347_v14 = vmul.f32 %v1902_v6, %v1346_v2 }
 0x153   :  { %v1348_v25 = vmul.f32 %v1904_v9, %v1347_v14 }
 0x155   :  { %v2245_v57 = vpop.f32.mrb[48].mxu0  ;;  %v1350_v4 = vrot.slane %v1348_v25, 4 }
 0x156   :  { %v568_v60 = vpop.f32.mrb[49].mxu0 }
 0x157   :  { %v2253_v0 = vpop.f32.mrb[50].mxu0 }
 0x158   :  { %975 = vmatmul.mubr.bf16.gmra.mrb[28].mxu1 %v1864_v11  ;;  %v571_v3 = vpop.f32.mrb[51].mxu0  ;;  %v1333_v11 = vrot.slane %v1331_v8, 4 }
 0x159   :  { %1584 = vmatprep.mubr.msk.bf16.mxu1 %vm833_vm0, %v1865_v13  ;;  %v1340_v13 = vmul.f32 %v1902_v6, %v1339_v1  ;;  %v1922_v1 = vmov 0.0|0.0  }
 0x15a   :  { %v1335_v19 = vadd.f32 %v1333_v11, %v1325_v10  ;;  %1773 = vmatprep.subr.bf16.mxu0 %v1922_v1 }
 0x15b   :  { %v1341_v21 = vmul.f32 %v1904_v9, %v1340_v13 }
 0x160   :  { %983 = vmatmul.mubr.bf16.gmra.mrb[32].mxu1 %v1867_v26  ;;  %v1342_v26 = vadd.f32 %v1341_v21, %v1335_v19 }
 0x161   :  { %1585 = vmatprep.mubr.msk.bf16.mxu1 %vm833_vm0, %v1868_v28  ;;  %v1882_v28 = vld [vmem:[%s2491_s2 + $0xd0] ss:$8 sps:$4 sm:$0xff]  }
 0x162   :  { %v2267_v5 = vadd.f32 %v1350_v4, %v1342_v26 }
 0x168   :  { %991 = vmatmul.mubr.bf16.gmra.mrb[36].mxu1 %v1870_v32  ;;  %v2272_v32 = vpop.f32.mrb[52].mxu0 }
 0x169   :  { %1586 = vmatprep.mubr.msk.bf16.mxu1 %vm833_vm0, %v1871_v35  ;;  %v584_v35 = vpop.f32.mrb[53].mxu0 }
 0x16a   :  { %v2277_v38 = vpop.f32.mrb[54].mxu0 }
 0x16b   :  { %v2279_v40 = vpop.f32.mrb[55].mxu0 }
 0x16c   :  { %v2292_v45 = vpop.f32.mrb[56].mxu0 }
 0x170   :  { %999 = vmatmul.mubr.bf16.gmra.mrb[40].mxu1 %v1873_v44  ;;  %v1888_v44 = vld [vmem:[%s2491_s2 + $0xf0] ss:$8 sps:$4 sm:$0xff]  }
 0x171   :  { %1587 = vmatprep.mubr.msk.bf16.mxu1 %vm833_vm0, %v1874_v47  ;;  %v2294_v47 = vpop.f32.mrb[57].mxu0 }
 0x172   :  { %v2296_v53 = vpop.f32.mrb[58].mxu0 }
 0x173   :  { %v2298_v55 = vpop.f32.mrb[59].mxu0 }
 0x178   :  { %1007 = vmatmul.mubr.bf16.gmra.mrb[44].mxu1 %v1876_v56  ;;  %v2300_v56 = vpop.f32.mrb[60].mxu0 }
 0x179   :  { %1588 = vmatprep.mubr.msk.bf16.mxu1 %vm833_vm0, %v1877_v58  ;;  %v2302_v58 = vpop.f32.mrb[61].mxu0 }
 0x17a   :  { %v2304_v59 = vpop.f32.mrb[62].mxu0 }
 0x17b   :  { %v2306_v61 = vpop.f32.mrb[63].mxu0 }
 0x180   :  { %1015 = vmatmul.mubr.bf16.gmra.mrb[48].mxu1 %v1879_v17 }
 0x181   :  { %1589 = vmatprep.mubr.msk.bf16.mxu1 %vm833_vm0, %v1880_v63 }
 0x188   :  { %1023 = vmatmul.mubr.bf16.gmra.mrb[52].mxu1 %v1882_v28 }
 0x189   :  { %1590 = vmatprep.mubr.msk.bf16.mxu1 %vm833_vm0, %v1883_v34 }
 0x190   :  { %1031 = vmatmul.mubr.bf16.gmra.mrb[56].mxu1 %v1885_v42  ;;  %v1924_v42 = vmov 0.0  }
 0x191   :  { %1591 = vmatprep.mubr.msk.bf16.mxu1 %vm833_vm0, %v1886_v43  ;;  %1770 = vmatprep.mubr.msk.f32.mxu0 %vm1923_vm2, %v1924_v42 }
 0x198   :  { %1039 = vmatmul.mubr.bf16.gmra.mrb[60].mxu1 %v1888_v44 }
 0x1f3   :  { %v920_v2 = vpop.f32.mrb[0].mxu1 }
 0x1f4   :  { %v1047_v6 = vand.u32 2147483647, %v920_v2  ;;  %v922_v7 = vpop.f32.mrb[1].mxu1 }
 0x1f5   :  { %v923_v8 = vpop.f32.mrb[2].mxu1 }
 0x1f6   :  { %v1095_v9 = vmul.f32 %v1047_v6, %v2187_v15  ;;  %v1370_v10 = vmul.f32 %v1047_v6, %v1047_v6  ;;  %v1151_v11 = vmul.f32 %v1047_v6, %v568_v60  ;;  %v1048_v13 = vand.u32 2147483647, %v923_v8  ;;  %v925_v14 = vpop.f32.mrb[3].mxu1 }
 0x1f8   :  { %v1096_v17 = vmul.f32 %v1048_v13, %v2191_v20  ;;  %v1371_v63 = vmul.f32 %v1048_v13, %v1048_v13  ;;  %v1152_v19 = vmul.f32 %v1048_v13, %v571_v3  ;;  %v1386_v21 = vsel %vm833_vm0, %v1370_v10, 0.0 }
 0x1fa   :  { %v1387_v25 = vsel %vm833_vm0, %v1371_v63, 0.0 }
 0x1fb   :  { %v1388_v26 = vadd.f32 %v1387_v25, %v1386_v21  ;;  %v928_v4 = vpop.f32.mrb[4].mxu1 }
 0x1fc   :  { %v1049_v28 = vand.u32 2147483647, %v928_v4  ;;  %v930_v34 = vpop.f32.mrb[5].mxu1 }
 0x1fd   :  { %v931_v15 = vpop.f32.mrb[6].mxu1 }
 0x1fe   :  { %v1097_v60 = vmul.f32 %v2182_v12, %v1049_v28  ;;  %v1153_v43 = vmul.f32 %v2245_v57, %v1049_v28  ;;  %v1372_v44 = vmul.f32 %v1049_v28, %v1049_v28  ;;  %v1050_v20 = vand.u32 2147483647, %v931_v15  ;;  %v933_v2 = vpop.f32.mrb[7].mxu1 }
 0x200   :  { %v1389_v3 = vsel %vm833_vm0, %v1372_v44, 0.0  ;;  %v1098_v6 = vmul.f32 %v2189_v16, %v1050_v20  ;;  %v1154_v7 = vmul.f32 %v2253_v0, %v1050_v20  ;;  %v1373_v8 = vmul.f32 %v1050_v20, %v1050_v20 }
 0x201   :  { %v1390_v10 = vadd.f32 %v1389_v3, %v1388_v26 }
 0x202   :  { %v1391_v13 = vsel %vm833_vm0, %v1373_v8, 0.0 }
 0x203   :  { %v1392_v14 = vadd.f32 %v1391_v13, %v1390_v10  ;;  %v936_v63 = vpop.f32.mrb[8].mxu1 }
 0x204   :  { %v1051_v21 = vand.u32 2147483647, %v936_v63  ;;  %v938_v25 = vpop.f32.mrb[9].mxu1 }
 0x205   :  { %v939_v12 = vpop.f32.mrb[10].mxu1 }
 0x206   :  { %v1099_v57 = vmul.f32 %v1051_v21, %v2202_v29  ;;  %v1374_v4 = vmul.f32 %v1051_v21, %v1051_v21  ;;  %v1155_v28 = vmul.f32 %v1051_v21, %v584_v35  ;;  %v1052_v34 = vand.u32 2147483647, %v939_v12  ;;  %v941_v42 = vpop.f32.mrb[11].mxu1 }
 0x208   :  { %v1111_v15 = vadd.f32 %v1099_v57, %v1095_v9  ;;  %v1393_v16 = vsel %vm833_vm0, %v1374_v4, 0.0  ;;  %v1167_v44 = vadd.f32 %v1155_v28, %v1151_v11  ;;  %v1100_v0 = vmul.f32 %v1052_v34, %v2206_v31 }
 0x209   :  { %v1394_v26 = vadd.f32 %v1393_v16, %v1392_v14  ;;  %v1375_v20 = vmul.f32 %v1052_v34, %v1052_v34  ;;  %v1156_v2 = vmul.f32 %v1052_v34, %v2279_v40 }
 0x20a   :  { %v1112_v3 = vadd.f32 %v1100_v0, %v1096_v17 }
 0x20b   :  { %v1395_v8 = vsel %vm833_vm0, %v1375_v20, 0.0  ;;  %v1168_v10 = vadd.f32 %v1156_v2, %v1152_v19  ;;  %v944_v13 = vpop.f32.mrb[12].mxu1 }
 0x20c   :  { %v1396_v29 = vadd.f32 %v1395_v8, %v1394_v26  ;;  %v1053_v63 = vand.u32 2147483647, %v944_v13  ;;  %v946_v35 = vpop.f32.mrb[13].mxu1 }
 0x20d   :  { %v947_v21 = vpop.f32.mrb[14].mxu1 }
 0x20e   :  { %v1101_v9 = vmul.f32 %v2197_v27, %v1053_v63  ;;  %v1157_v25 = vmul.f32 %v2272_v32, %v1053_v63  ;;  %v1376_v11 = vmul.f32 %v1053_v63, %v1053_v63  ;;  %v1054_v12 = vand.u32 2147483647, %v947_v21  ;;  %v949_v31 = vpop.f32.mrb[15].mxu1 }
 0x210   :  { %v1113_v14 = vadd.f32 %v1101_v9, %v1097_v60  ;;  %v1169_v57 = vadd.f32 %v1157_v25, %v1153_v43  ;;  %v1397_v40 = vsel %vm833_vm0, %v1376_v11, 0.0  ;;  %v1102_v17 = vmul.f32 %v2204_v30, %v1054_v12 }
 0x211   :  { %v1398_v4 = vadd.f32 %v1397_v40, %v1396_v29  ;;  %v1158_v19 = vmul.f32 %v2277_v38, %v1054_v12  ;;  %v1377_v28 = vmul.f32 %v1054_v12, %v1054_v12 }
 0x212   :  { %v1114_v34 = vadd.f32 %v1102_v17, %v1098_v6 }
 0x213   :  { %v1170_v42 = vadd.f32 %v1158_v19, %v1154_v7  ;;  %v1399_v16 = vsel %vm833_vm0, %v1377_v28, 0.0  ;;  %v952_v27 = vpop.f32.mrb[16].mxu1 }
 0x214   :  { %v1400_v0 = vadd.f32 %v1399_v16, %v1398_v4  ;;  %v1055_v32 = vand.u32 2147483647, %v952_v27  ;;  %v954_v26 = vpop.f32.mrb[17].mxu1 }
 0x215   :  { %v955_v20 = vpop.f32.mrb[18].mxu1 }
 0x216   :  { %v1103_v60 = vmul.f32 %v1055_v32, %v2217_v24  ;;  %v1378_v43 = vmul.f32 %v1055_v32, %v1055_v32  ;;  %v1159_v2 = vmul.f32 %v1055_v32, %v2294_v47  ;;  %v1056_v8 = vand.u32 2147483647, %v955_v20  ;;  %v957_v30 = vpop.f32.mrb[19].mxu1 }
 0x218   :  { %v1115_v13 = vadd.f32 %v1111_v15, %v1103_v60  ;;  %v1401_v38 = vsel %vm833_vm0, %v1378_v43, 0.0  ;;  %v1171_v29 = vadd.f32 %v1167_v44, %v1159_v2  ;;  %v1104_v6 = vmul.f32 %v1056_v8, %v2221_v39 }
 0x219   :  { %v1402_v7 = vadd.f32 %v1401_v38, %v1400_v0  ;;  %v1379_v63 = vmul.f32 %v1056_v8, %v1056_v8  ;;  %v1160_v35 = vmul.f32 %v1056_v8, %v2298_v55  ;;  %v1434_v0 = vrot.slane %v2120_v41, 4 }
 0x21a   :  { %v1116_v21 = vadd.f32 %v1112_v3, %v1104_v6 }
 0x21b   :  { %v1403_v9 = vsel %vm833_vm0, %v1379_v63, 0.0  ;;  %v1172_v25 = vadd.f32 %v1168_v10, %v1160_v35  ;;  %v960_v24 = vpop.f32.mrb[20].mxu1 }
 0x21c   :  { %v1404_v11 = vadd.f32 %v1403_v9, %v1402_v7  ;;  %v1057_v12 = vand.u32 2147483647, %v960_v24  ;;  %v962_v47 = vpop.f32.mrb[21].mxu1 }
 0x21d   :  { %v963_v31 = vpop.f32.mrb[22].mxu1 }
 0x21e   :  { %v1105_v15 = vmul.f32 %v2212_v33, %v1057_v12  ;;  %v1161_v40 = vmul.f32 %v2292_v45, %v1057_v12  ;;  %v1380_v44 = vmul.f32 %v1057_v12, %v1057_v12  ;;  %v1058_v17 = vand.u32 2147483647, %v963_v31  ;;  %v965_v39 = vpop.f32.mrb[23].mxu1 }
 0x220   :  { %v1117_v4 = vadd.f32 %v1113_v14, %v1105_v15  ;;  %v1173_v19 = vadd.f32 %v1169_v57, %v1161_v40  ;;  %v1405_v55 = vsel %vm833_vm0, %v1380_v44, 0.0  ;;  %v1106_v3 = vmul.f32 %v2219_v37, %v1058_v17 }
 0x221   :  { %v1406_v28 = vadd.f32 %v1405_v55, %v1404_v11  ;;  %v1162_v10 = vmul.f32 %v2296_v53, %v1058_v17  ;;  %v1381_v16 = vmul.f32 %v1058_v17, %v1058_v17  ;;  %v1435_v53 = vadd.f32 %v1434_v0, %v2120_v41 }
 0x222   :  { %v1118_v27 = vadd.f32 %v1114_v34, %v1106_v3 }
 0x223   :  { %v1174_v32 = vadd.f32 %v1170_v42, %v1162_v10  ;;  %v1407_v33 = vsel %vm833_vm0, %v1381_v16, 0.0  ;;  %v968_v45 = vpop.f32.mrb[24].mxu1  ;;  %v1436_v9 = vrot.slane %v1435_v53, 2 }
 0x224   :  { %v1408_v26 = vadd.f32 %v1407_v33, %v1406_v28  ;;  %v1059_v20 = vand.u32 2147483647, %v968_v45  ;;  %v970_v60 = vpop.f32.mrb[25].mxu1 }
 0x225   :  { %v971_v14 = vpop.f32.mrb[26].mxu1  ;;  %v2364_v40 = vadd.f32 %v1436_v9, %v1435_v53 }
 0x226   :  { %v1107_v57 = vmul.f32 %v1059_v20, %v2232_v48  ;;  %v1163_v43 = vmul.f32 %v1059_v20, %v2302_v58  ;;  %v1382_v37 = vmul.f32 %v1059_v20, %v1059_v20  ;;  %v1060_v2 = vand.u32 2147483647, %v971_v14  ;;  %v973_v8 = vpop.f32.mrb[27].mxu1 }
 0x228   :  { %v1119_v34 = vadd.f32 %v1115_v13, %v1107_v57  ;;  %v1175_v30 = vadd.f32 %v1171_v29, %v1163_v43  ;;  %v1409_v42 = vsel %vm833_vm0, %v1382_v37, 0.0  ;;  %v1108_v38 = vmul.f32 %v1060_v2, %v2236_v50 }
 0x229   :  { %v1410_v6 = vadd.f32 %v1409_v42, %v1408_v26  ;;  %v1164_v7 = vmul.f32 %v1060_v2, %v2306_v61  ;;  %v1383_v63 = vmul.f32 %v1060_v2, %v1060_v2 }
 0x22a   :  { %v2350_v35 = vadd.f32 %v1119_v34, %v2098_v23  ;;  %v2353_v48 = vadd.f32 %v1175_v30, %v2098_v23  ;;  %v1120_v58 = vadd.f32 %v1116_v21, %v1108_v38 }
 0x22b   :  { %v1176_v24 = vadd.f32 %v1172_v25, %v1164_v7  ;;  %v1411_v41 = vsel %vm833_vm0, %v1383_v63, 0.0  ;;  %v976_v13 = vpop.f32.mrb[28].mxu1 }
 0x22c   :  { %v1131_v29 = vmin.f32 %v2350_v35, 0.0  ;;  %v1187_v50 = vmin.f32 %v2353_v48, 0.0  ;;  %v978_v11 = vpop.f32.mrb[29].mxu1  ;;  %v2359_v61 = vadd.f32 %v2091_v18, %v1120_v58  ;;  %v1412_v47 = vadd.f32 %v1411_v41, %v1410_v6 }
 0x22d   :  { %v2362_v12 = vadd.f32 %v2091_v18, %v1176_v24  ;;  %v1061_v23 = vand.u32 2147483647, %v976_v13  ;;  %v979_v31 = vpop.f32.mrb[30].mxu1  ;;  %vm1127_vm3 = vcmp.gt.f32.partialorder %v2350_v35, 0.0  ;;  %vm1183_vm4 = vcmp.gt.f32.partialorder %v2353_v48, 0.0 }
 0x22e   :  { %v1135_v21 = vmul.f32 1.442695, %v1131_v29  ;;  %v1191_v15 = vmul.f32 1.442695, %v1187_v50  ;;  %v1062_v25 = vand.u32 2147483647, %v979_v31 }
 0x22f   :  { %v1132_v44 = vmin.f32 %v2359_v61, 0.0  ;;  %v1188_v17 = vmin.f32 %v2362_v12, 0.0  ;;  %v981_v39 = vpop.f32.mrb[31].mxu1  ;;  %v1109_v55 = vmul.f32 %v2227_v46, %v1061_v23  ;;  %v1165_v3 = vmul.f32 %v2300_v56, %v1061_v23 }
 0x230   :  { %1905 = vpow2.f32 %v1135_v21  ;;  %v1384_v18 = vmul.f32 %v1061_v23, %v1061_v23  ;;  %v1110_v16 = vmul.f32 %v2234_v49, %v1062_v25  ;;  %v1166_v26 = vmul.f32 %v2304_v59, %v1062_v25 }
 0x231   :  { %1907 = vpow2.f32 %v1191_v15  ;;  %v1137_v28 = vmul.f32 1.442695, %v1132_v44  ;;  %v1193_v10 = vmul.f32 1.442695, %v1188_v17  ;;  %v1121_v0 = vadd.f32 %v1117_v4, %v1109_v55 }
 0x232   :  { %v1177_v33 = vadd.f32 %v1173_v19, %v1165_v3  ;;  %v1413_v45 = vsel %vm833_vm0, %v1384_v18, 0.0  ;;  %v1122_v60 = vadd.f32 %v1118_v27, %v1110_v16  ;;  %v1385_v14 = vmul.f32 %v1062_v25, %v1062_v25 }
 0x233   :  { %1909 = vpow2.f32 %v1137_v28  ;;  %v1414_v20 = vadd.f32 %v1413_v45, %v1412_v47  ;;  %v984_v57 = vpop.f32.mrb[32].mxu1  ;;  %v2374_v46 = vadd.f32 %v2096_v22, %v1121_v0  ;;  %v1178_v43 = vadd.f32 %v1174_v32, %v1166_v26 }
 0x234   :  { %1911 = vpow2.f32 %v1193_v10  ;;  %v2377_v56 = vadd.f32 %v2096_v22, %v1177_v33  ;;  %v986_v49 = vpop.f32.mrb[33].mxu1  ;;  %v2380_v4 = vadd.f32 %v1122_v60, %v2114_v36  ;;  %v1415_v19 = vsel %vm833_vm0, %v1385_v14, 0.0 }
 0x235   :  { %v1063_v59 = vand.u32 2147483647, %v984_v57  ;;  %v987_v37 = vpop.f32.mrb[34].mxu1  ;;  %v1438_v27 = vrot.slane %v2364_v40, 1  ;;  %v1133_v2 = vmin.f32 %v2374_v46, 0.0  ;;  %v2389_v32 = vadd.f32 %v1178_v43, %v2114_v36 }
 0x236   :  { %v1189_v8 = vmin.f32 %v2377_v56, 0.0  ;;  %v989_v53 = vpop.f32.mrb[35].mxu1  ;;  %v1134_v22 = vmin.f32 %v2380_v4, 0.0  ;;  %v1416_v34 = vadd.f32 %v1415_v19, %v1414_v20  ;;  %vm1128_vm5 = vcmp.gt.f32.partialorder %v2359_v61, 0.0 }
 0x237   :  { %v1139_v30 = vmul.f32 1.442695, %v1133_v2  ;;  %v1079_v38 = vadd.f32 1e-10, %v1063_v59  ;;  %v1190_v7 = vmin.f32 %v2389_v32, 0.0  ;;  %vm1184_vm6 = vcmp.gt.f32.partialorder %v2362_v12, 0.0 }
 0x238   :  { %v1195_v42 = vmul.f32 1.442695, %v1189_v8  ;;  %v1141_v6 = vmul.f32 1.442695, %v1134_v22  ;;  %v1417_v63 = vrot.slane %v1416_v34, 4  ;;  %v1439_v59 = vadd.f32 %v1438_v27, %v2364_v40 }
 0x239   :  { %1913 = vpow2.f32 %v1139_v30  ;;  %v1064_v9 = vand.u32 2147483647, %v987_v37  ;;  %v1197_v36 = vmul.f32 1.442695, %v1190_v7  ;;  %v1440_v11 = vmul.f32 %v1079_v38, %v1079_v38 }
 0x23a   :  { %v1906_v58 = vpop.eup %1905  ;;  %1915 = vpow2.f32 %v1195_v42  ;;  %v1418_v41 = vadd.f32 %v1417_v63, %v1416_v34  ;;  %vm1129_vm8 = vcmp.gt.f32.partialorder %v2374_v46, 0.0  ;;  %vm1185_vm9 = vcmp.gt.f32.partialorder %v2377_v56, 0.0 }
 0x23b   :  { %v1908_v24 = vpop.eup %1907  ;;  %v1592_v13 = vadd.f32 -1.0, %v1906_v58  ;;  %v992_v29 = vpop.f32.mrb[36].mxu1  ;;  %1917 = vpow2.f32 %v1141_v6  ;;  %v1080_v47 = vadd.f32 1e-10, %v1064_v9  ;;  %v1456_v45 = vsel %vm833_vm0, %v1440_v11, 0.0 }
 0x23c   :  { %v1596_v50 = vadd.f32 -1.0, %v1908_v24  ;;  %v994_v23 = vpop.f32.mrb[37].mxu1  ;;  %1919 = vpow2.f32 %v1197_v36  ;;  %v1419_v21 = vrot.slane %v1418_v41, 2  ;;  %v1065_v25 = vand.u32 2147483647, %v992_v29 }
 0x23d   :  { %v1910_v31 = vpop.eup %1909  ;;  %v1147_v15 = vsel %vm1127_vm3, %v2350_v35, %v1592_v13  ;;  %v995_v44 = vpop.f32.mrb[38].mxu1  ;;  %v1441_v3 = vmul.f32 %v1080_v47, %v1080_v47  ;;  %vm1130_vm10 = vcmp.gt.f32.partialorder %v2380_v4, 0.0  ;;  %vm1186_vm11 = vcmp.gt.f32.partialorder %v2389_v32, 0.0 }
 0x23e   :  { %v1912_v17 = vpop.eup %1911  ;;  %v1203_v39 = vsel %vm1183_vm4, %v2353_v48, %v1596_v50  ;;  %v1593_v55 = vadd.f32 -1.0, %v1910_v31  ;;  %v1066_v18 = vand.u32 2147483647, %v995_v44  ;;  %v997_v28 = vpop.f32.mrb[39].mxu1  ;;  %v1420_v10 = vadd.f32 %v1419_v21, %v1418_v41 }
 0x23f   :  { %v2401_v16 = vsub.f32 %v1147_v15, %v1203_v39  ;;  %v1597_v0 = vadd.f32 -1.0, %v1912_v17  ;;  %v1081_v33 = vadd.f32 1e-10, %v1065_v25  ;;  %v1457_v26 = vsel %vm833_vm0, %v1441_v3, 0.0 }
 0x240   :  { %v1148_v35 = vsel %vm1128_vm5, %v2359_v61, %v1593_v55  ;;  %v1082_v20 = vadd.f32 1e-10, %v1066_v18  ;;  %v1421_v60 = vrot.slane %v1420_v10, 1  ;;  %v1458_v57 = vadd.f32 %v1457_v26, %v1456_v45 }
 0x241   :  { %v1211_v48 = vmul.f32 %v2401_v16, %v1079_v38  ;;  %v1204_v14 = vsel %vm1184_vm6, %v2362_v12, %v1597_v0  ;;  %v1442_v49 = vmul.f32 %v1081_v33, %v1081_v33 }
 0x242   :  { %v2412_v43 = vsub.f32 %v1148_v35, %v1204_v14  ;;  %v1443_v19 = vmul.f32 %v1082_v20, %v1082_v20  ;;  %v1422_v61 = vadd.f32 %v1421_v60, %v1420_v10 }
 0x243   :  { %v1000_v37 = vpop.f32.mrb[40].mxu1  ;;  %v1914_v2 = vpop.eup %1913  ;;  %v1459_v53 = vsel %vm833_vm0, %v1442_v49, 0.0 }
 0x244   :  { %v1212_v8 = vmul.f32 %v2412_v43, %v1080_v47  ;;  %v1461_v22 = vsel %vm833_vm0, %v1443_v19, 0.0  ;;  %v1067_v12 = vand.u32 2147483647, %v1000_v37  ;;  %v1002_v34 = vpop.f32.mrb[41].mxu1  ;;  %v1916_v30 = vpop.eup %1915  ;;  %v2421_v42 = vsel %vm1493_vm7, %v1422_v61, %v1439_v59 }
 0x245   :  { %v1594_v40 = vadd.f32 -1.0, %v1914_v2  ;;  %v1460_v27 = vadd.f32 %v1459_v53, %v1458_v57  ;;  %v1003_v38 = vpop.f32.mrb[42].mxu1  ;;  %v1918_v6 = vpop.eup %1917  ;;  %v1598_v63 = vadd.f32 -1.0, %v1916_v30 }
 0x246   :  { %v1774_v7 = vpack.c.bf16 %v1212_v8, %v1211_v48  ;;  %v1083_v58 = vadd.f32 1e-10, %v1067_v12  ;;  %v1068_v9 = vand.u32 2147483647, %v1003_v38  ;;  %v1005_v24 = vpop.f32.mrb[43].mxu1  ;;  %v1920_v36 = vpop.eup %1919  ;;  %v1595_v13 = vadd.f32 -1.0, %v1918_v6 }
 0x247   :  { %v1149_v41 = vsel %vm1129_vm8, %v2374_v46, %v1594_v40  ;;  %v1462_v29 = vadd.f32 %v1461_v22, %v1460_v27  ;;  %v1205_v50 = vsel %vm1185_vm9, %v2377_v56, %v1598_v63  ;;  %v1599_v11 = vadd.f32 -1.0, %v1920_v36 }
 0x248   :  { %v1215_v47 = vmul.f32 %v2401_v16, %v1083_v58  ;;  %v1444_v23 = vmul.f32 %v1083_v58, %v1083_v58  ;;  %1775 = vmatpush3.bf16.msra.mxu0 %v1774_v7  ;;  %v2432_v31 = vsub.f32 %v1149_v41, %v1205_v50  ;;  %v1150_v21 = vsel %vm1130_vm10, %v2380_v4, %v1595_v13 }
 0x249   :  { %v1084_v15 = vadd.f32 1e-10, %v1068_v9  ;;  %1776 = vmatprep.subr.bf16.mxu0 %v1922_v1  ;;  %v1206_v46 = vsel %vm1186_vm11, %v2389_v32, %v1599_v11 }
 0x24a   :  { %v1463_v25 = vsel %vm833_vm0, %v1444_v23, 0.0  ;;  %v1213_v56 = vmul.f32 %v2432_v31, %v1081_v33  ;;  %v2439_v44 = vsub.f32 %v1150_v21, %v1206_v46 }
 0x24b   :  { %v1464_v17 = vadd.f32 %v1463_v25, %v1462_v29  ;;  %v1216_v39 = vmul.f32 %v2412_v43, %v1084_v15  ;;  %v1008_v55 = vpop.f32.mrb[44].mxu1  ;;  %v1445_v3 = vmul.f32 %v1084_v15, %v1084_v15 }
 0x24c   :  { %v1069_v18 = vand.u32 2147483647, %v1008_v55  ;;  %v1010_v28 = vpop.f32.mrb[45].mxu1  ;;  %v1214_v4 = vmul.f32 %v2439_v44, %v1082_v20 }
 0x24d   :  { %v1780_v10 = vpack.c.bf16 %v1216_v39, %v1215_v47  ;;  %v1011_v0 = vpop.f32.mrb[46].mxu1  ;;  %v1465_v45 = vsel %vm833_vm0, %v1445_v3, 0.0 }
 0x24e   :  { %v1085_v32 = vadd.f32 1e-10, %v1069_v18  ;;  %v1070_v35 = vand.u32 2147483647, %v1011_v0  ;;  %v1013_v26 = vpop.f32.mrb[47].mxu1  ;;  %v1777_v60 = vpack.c.bf16 %v1214_v4, %v1213_v56  ;;  %v1466_v33 = vadd.f32 %v1465_v45, %v1464_v17 }
 0x250   :  { %v1217_v48 = vmul.f32 %v2432_v31, %v1085_v32  ;;  %v1446_v14 = vmul.f32 %v1085_v32, %v1085_v32  ;;  %v1086_v57 = vadd.f32 1e-10, %v1070_v35  ;;  %1778 = vmatpush3.bf16.msra.mxu0 %v1777_v60 }
 0x251   :  { %1779 = vmatprep.subr.bf16.mxu0 %v1922_v1 }
 0x252   :  { %v1467_v49 = vsel %vm833_vm0, %v1446_v14, 0.0  ;;  %v1218_v19 = vmul.f32 %v2439_v44, %v1086_v57  ;;  %v1447_v59 = vmul.f32 %v1086_v57, %v1086_v57 }
 0x253   :  { %v1468_v20 = vadd.f32 %v1467_v49, %v1466_v33  ;;  %v1016_v61 = vpop.f32.mrb[48].mxu1 }
 0x254   :  { %v1783_v37 = vpack.c.bf16 %v1218_v19, %v1217_v48  ;;  %v1469_v2 = vsel %vm833_vm0, %v1447_v59, 0.0  ;;  %v1071_v8 = vand.u32 2147483647, %v1016_v61  ;;  %v1018_v53 = vpop.f32.mrb[49].mxu1  ;;  %1781 = vmatpush3.bf16.msra.mxu0 %v1780_v10 }
 0x255   :  { %v1470_v22 = vadd.f32 %v1469_v2, %v1468_v20  ;;  %v1019_v12 = vpop.f32.mrb[50].mxu1  ;;  %1782 = vmatprep.subr.bf16.mxu0 %v1922_v1 }
 0x256   :  { %v1087_v34 = vadd.f32 1e-10, %v1071_v8  ;;  %v1072_v30 = vand.u32 2147483647, %v1019_v12  ;;  %v1021_v40 = vpop.f32.mrb[51].mxu1 }
 0x258   :  { %v1219_v27 = vmul.f32 %v2401_v16, %v1087_v34  ;;  %v1448_v38 = vmul.f32 %v1087_v34, %v1087_v34  ;;  %v1088_v6 = vadd.f32 1e-10, %v1072_v30  ;;  %1784 = vmatpush3.bf16.msra.mxu0 %v1783_v37 }
 0x259   :  { %1785 = vmatprep.subr.bf16.mxu0 %v1922_v1 }
 0x25a   :  { %v1471_v7 = vsel %vm833_vm0, %v1448_v38, 0.0  ;;  %v1220_v63 = vmul.f32 %v2412_v43, %v1088_v6  ;;  %v1449_v58 = vmul.f32 %v1088_v6, %v1088_v6 }
 0x25b   :  { %v1472_v9 = vadd.f32 %v1471_v7, %v1470_v22  ;;  %v1024_v24 = vpop.f32.mrb[52].mxu1 }
 0x25c   :  { %v1786_v36 = vpack.c.bf16 %v1220_v63, %v1219_v27  ;;  %v1473_v41 = vsel %vm833_vm0, %v1449_v58, 0.0  ;;  %v1073_v13 = vand.u32 2147483647, %v1024_v24  ;;  %v1026_v29 = vpop.f32.mrb[53].mxu1 }
 0x25d   :  { %v1474_v50 = vadd.f32 %v1473_v41, %v1472_v9  ;;  %v1027_v11 = vpop.f32.mrb[54].mxu1  ;;  %v1227_v9 = vld [vmem:[%s2492_s3] sm:$0xff] }
 0x25e   :  { %v1089_v47 = vadd.f32 1e-10, %v1073_v13  ;;  %v1074_v23 = vand.u32 2147483647, %v1027_v11  ;;  %1787 = vmatpush3.bf16.msra.mxu0 %v1786_v36  ;;  %v1029_v21 = vpop.f32.mrb[55].mxu1 }
 0x25f   :  { %1788 = vmatprep.subr.bf16.mxu0 %v1922_v1 }
 0x260   :  { %v1221_v15 = vmul.f32 %v2432_v31, %v1089_v47  ;;  %v1450_v46 = vmul.f32 %v1089_v47, %v1089_v47  ;;  %v1090_v25 = vadd.f32 1e-10, %v1074_v23 }
 0x262   :  { %v1475_v56 = vsel %vm833_vm0, %v1450_v46, 0.0  ;;  %v1222_v17 = vmul.f32 %v2439_v44, %v1090_v25  ;;  %v1451_v39 = vmul.f32 %v1090_v25, %v1090_v25 }
 0x263   :  { %v1476_v55 = vadd.f32 %v1475_v56, %v1474_v50  ;;  %v1032_v3 = vpop.f32.mrb[56].mxu1  ;;  %v1600_v50 = vadd.f32 -1.0, %v2267_v5 }
 0x264   :  { %v1789_v18 = vpack.c.bf16 %v1222_v17, %v1221_v15  ;;  %v1477_v28 = vsel %vm833_vm0, %v1451_v39, 0.0  ;;  %v1075_v4 = vand.u32 2147483647, %v1032_v3  ;;  %v1034_v10 = vpop.f32.mrb[57].mxu1 }
 0x265   :  { %v1478_v0 = vadd.f32 %v1477_v28, %v1476_v55  ;;  %v1035_v45 = vpop.f32.mrb[58].mxu1 }
 0x266   :  { %v1091_v32 = vadd.f32 1e-10, %v1075_v4  ;;  %v1076_v35 = vand.u32 2147483647, %v1035_v45  ;;  %1790 = vmatpush3.bf16.msra.mxu0 %v1789_v18  ;;  %v1037_v26 = vpop.f32.mrb[59].mxu1 }
 0x267   :  { %1791 = vmatprep.subr.bf16.mxu0 %v1922_v1 }
 0x268   :  { %v1223_v60 = vmul.f32 %v2401_v16, %v1091_v32  ;;  %v1452_v33 = vmul.f32 %v1091_v32, %v1091_v32  ;;  %v1092_v48 = vadd.f32 1e-10, %v1076_v35 }
 0x26a   :  { %v1479_v14 = vsel %vm833_vm0, %v1452_v33, 0.0  ;;  %v1224_v57 = vmul.f32 %v2412_v43, %v1092_v48  ;;  %v1453_v49 = vmul.f32 %v1092_v48, %v1092_v48 }
 0x26b   :  { %v1480_v19 = vadd.f32 %v1479_v14, %v1478_v0  ;;  %v1040_v59 = vpop.f32.mrb[60].mxu1 }
 0x26c   :  { %v1792_v20 = vpack.c.bf16 %v1224_v57, %v1223_v60  ;;  %v1481_v61 = vsel %vm833_vm0, %v1453_v49, 0.0  ;;  %v1077_v37 = vand.u32 2147483647, %v1040_v59  ;;  %v1042_v2 = vpop.f32.mrb[61].mxu1 }
 0x26d   :  { %v1482_v8 = vadd.f32 %v1481_v61, %v1480_v19  ;;  %v1043_v53 = vpop.f32.mrb[62].mxu1 }
 0x26e   :  { %v1093_v22 = vadd.f32 1e-10, %v1077_v37  ;;  %v1078_v12 = vand.u32 2147483647, %v1043_v53  ;;  %1793 = vmatpush3.bf16.msra.mxu0 %v1792_v20  ;;  %v1045_v16 = vpop.f32.mrb[63].mxu1 }
 0x26f   :  { %1794 = vmatprep.subr.bf16.mxu0 %v1922_v1 }
 0x270   :  { %v1225_v34 = vmul.f32 %v2432_v31, %v1093_v22  ;;  %v1454_v30 = vmul.f32 %v1093_v22, %v1093_v22  ;;  %v1094_v43 = vadd.f32 1e-10, %v1078_v12 }
 0x272   :  { %v1483_v40 = vsel %vm833_vm0, %v1454_v30, 0.0  ;;  %v1226_v27 = vmul.f32 %v2439_v44, %v1094_v43  ;;  %v1455_v38 = vmul.f32 %v1094_v43, %v1094_v43 }
 0x273   :  { %v1484_v6 = vadd.f32 %v1483_v40, %v1482_v8 }
 0x274   :  { %v1795_v7 = vpack.c.bf16 %v1226_v27, %v1225_v34  ;;  %v1485_v63 = vsel %vm833_vm0, %v1455_v38, 0.0 }
 0x275   :  { %v1486_v58 = vadd.f32 %v1485_v63, %v1484_v6 }
 0x276   :  { %1796 = vmatpush3.bf16.msra.mxu0 %v1795_v7 }
 0x277   :  { %v1487_v1 = vrot.slane %v1486_v58, 4 }
 0x279   :  { %v1488_v24 = vadd.f32 %v1487_v1, %v1486_v58  ;;  %1771 = vmatmul.mubr.f32.vlgmr.msra.gmra.mrb[64].mxu0 %v1227_v9 }
 0x27b   :  { %v1489_v31 = vrot.slane %v1488_v24, 2 }
 0x27d   :  { %v1490_v36 = vadd.f32 %v1489_v31, %v1488_v24 }
 0x27f   :  { %v1491_v41 = vrot.slane %v1490_v36, 1 }
 0x281   :  { %v1492_v13 = vadd.f32 %v1491_v41, %v1490_v36 }
 0x283   :  { %v1496_v44 = vsel %vm1495_vm12, %v2421_v42, %v1492_v13 }
 0x284   :  { %v1498_v29 = vsel %vm1497_vm13, %v1496_v44, 0.0 }
 0x285   :  { %1499 = vst.msk [vmem:[%s2493_s6 + $0x8] sm:$0xff] %vm833_vm0, %v1498_v29 }
 0x34c   :  { %v1294_v11 = vpop.f32.mrb[64].mxu0 }
 0x34d   :  { %v1354_v47 = vmul.f32 %v1600_v50, %v1294_v11  ;;  %v1772_v23 = vpop.f32.mrb[65].mxu0 }
 0x34f   :  { %v1356_v21 = vsel %vm1355_vm14, %v1354_v47, 0.0 }
 0x350   :  { %v1357_v15 = vrot.slane %v1356_v21, 4 }
 0x352   :  { %v1358_v46 = vadd.f32 %v1357_v15, %v1356_v21 }
 0x354   :  { %v1359_v25 = vrot.slane %v1358_v46, 2 }
 0x356   :  { %v1360_v56 = vadd.f32 %v1359_v25, %v1358_v46 }
 0x358   :  { %v1361_v17 = vrot.slane %v1360_v56, 1 }
 0x35a   :  { %v1362_v39 = vadd.f32 %v1361_v17, %v1360_v56 }
 0x35c   :  { %v1363_v42 = vsub.f32 %v1362_v39, %v2135_v52 }
 0x35e   :  { %v1367_v55 = vrot.slane %v1363_v42, %v1322_v51 }
 0x360   :  { %v1368_v3 = vadd.f32 %v2137_v54, %v1367_v55 }
 0x362   :  { %1369 = vst.msk [vmem:[%s2493_s6] sm:$0xff] %vm833_vm0, %v1368_v3 }

</bundles_post_ra>
